<compile_context>
chip_gen: v6e
topology: v6e:2x2x1
jax: 0.10.0
libtpu: 0.0.40
codegen_flags: <defaults>
</compile_context>

<pallas_src>
import functools

import jax
import jax.numpy as jnp
from jax.experimental import pallas as pl
from jax.experimental.pallas import tpu as pltpu


LN_EPS = 1e-12


# ----------------------------- kernel helpers -----------------------------

def _layernorm(y, gamma, beta):
    mu = jnp.mean(y, axis=-1, keepdims=True)
    var = jnp.mean(jnp.square(y - mu), axis=-1, keepdims=True)
    return (y - mu) * jax.lax.rsqrt(var + LN_EPS) * gamma + beta


def _bf16_dot(a_f32, w_bf16):
    """MXU matmul: bf16 operands (weights pre-cast offline), f32 accumulation."""
    return jnp.dot(a_f32.astype(jnp.bfloat16), w_bf16,
                   preferred_element_type=jnp.float32)


# ----------------------------- fused encoder kernel -----------------------------

def _encoder_kernel(x_ref, mask_ref, *rest,
                    n_features, num_layers, num_heads, head_dim, hidden):
    """One grid step = one batch element.  Everything stays in VMEM.

    rest = (fe_0..fe_{n-1},
            emb_g, emb_b,
            wqkv, bqkv, wo, bo, ln1g, ln1b, w1, b1, w2, b2, ln2g, ln2b,
            dense_w, dense_b, out)
    Per-layer weights are stacked along a leading L axis and indexed statically.
    """
    fe_refs = rest[:n_features]
    (emb_g_ref, emb_b_ref,
     wqkv_ref, bqkv_ref, wo_ref, bo_ref, ln1g_ref, ln1b_ref,
     w1_ref, b1_ref, w2_ref, b2_ref, ln2g_ref, ln2b_ref,
     dw_ref, db_ref, o_ref) = rest[n_features:]

    H = hidden
    x = x_ref[...]                                                # (S, H) word+pos emb, f32
    h = _layernorm(x, emb_g_ref[...], emb_b_ref[...])            # embedding LayerNorm

    mask = mask_ref[0]                                            # (1, S) additive bias

    for l in range(num_layers):                                   # static unroll
        # ---------------- attention block ----------------
        qkv = _bf16_dot(h, wqkv_ref[l]) + bqkv_ref[l]             # (S, 3H) f32
        qkv_bf = qkv.astype(jnp.bfloat16)                         # cast once for the MXU
        ctx_parts = []
        for hd in range(num_heads):
            lo = hd * head_dim
            q = qkv_bf[:, lo:lo + head_dim]                       # scale pre-folded into wqkv
            k = qkv_bf[:, H + lo:H + lo + head_dim]
            v = qkv_bf[:, 2 * H + lo:2 * H + lo + head_dim]
            # q @ k^T via dot_general contracting dh -> no materialized transpose.
            s = jax.lax.dot_general(q, k, (((1,), (1,)), ((), ())),
                                    preferred_element_type=jnp.float32)
            s = s + mask                                          # (S, S) f32
            s_max = jnp.max(s, axis=-1, keepdims=True)
            p = jnp.exp(s - s_max)
            denom = jnp.sum(p, axis=-1, keepdims=True)
            p = p * pl.reciprocal(denom, approx=True)             # EUP reciprocal
            ctx_parts.append(jnp.dot(p.astype(jnp.bfloat16), v,
                                     preferred_element_type=jnp.float32))
        ctx = jnp.concatenate(ctx_parts, axis=-1)                 # (S, H) lane-dense
        attn = _bf16_dot(ctx, wo_ref[l]) + bo_ref[l]              # output projection
        h = _layernorm(attn + h, ln1g_ref[l], ln1b_ref[l])        # residual + LN

        # ---------------- FFN block ----------------
        mid = _bf16_dot(h, w1_ref[l]) + b1_ref[l]                 # (S, F)
        # TODO(synk): HF BertIntermediate uses exact erf GELU; tanh approximation used here.
        mid = jax.nn.gelu(mid)
        ffn = _bf16_dot(mid, w2_ref[l]) + b2_ref[l]               # (S, H)
        h = _layernorm(ffn + h, ln2g_ref[l], ln2b_ref[l])         # residual + LN

    # -------- final dense projection fused with feature-embedding concat --------
    proj = _bf16_dot(h, dw_ref[...]) + db_ref[...]                # (S, N)
    if n_features:
        out = jnp.concatenate([proj] + [fe[...] for fe in fe_refs], axis=-1)
    else:
        out = proj
    o_ref[...] = out.astype(o_ref.dtype)


def _const_spec(arr):
    nd = arr.ndim
    return pl.BlockSpec(arr.shape, lambda b, _nd=nd: (0,) * _nd)


def bert_encoder_fused(x_emb, mask_bias, feature_embeds, kp, *, batch, seq, cfg,
                       only_bert=False):
    """Single pallas_call running the entire encoder stack."""
    H, F, L, nh = cfg["hidden"], cfg["ffn"], cfg["num_layers"], cfg["heads"]

    if only_bert:
        dw, db = kp["dense_w_pad"], kp["dense_b_pad"]   # lane-padded to 128 columns
        feature_embeds = ()
    else:
        dw, db = kp["dense_w"], kp["dense_b"]
    N = dw.shape[1]
    out_dim = N + sum(fe.shape[1] for fe in feature_embeds)

    in_specs = [
        pl.BlockSpec((seq, H), lambda b: (b, 0)),           # x (per-batch slab)
        pl.BlockSpec((1, 1, seq), lambda b: (b, 0, 0)),     # additive mask bias
    ]
    for fe in feature_embeds:
        in_specs.append(pl.BlockSpec((seq, fe.shape[1]), lambda b: (b, 0)))

    weight_args = [
        kp["emb_g"], kp["emb_b"],
        kp["wqkv"], kp["bqkv"], kp["wo"], kp["bo"], kp["ln1_g"], kp["ln1_b"],
        kp["w1"], kp["b1"], kp["w2"], kp["b2"], kp["ln2_g"], kp["ln2_b"],
        dw, db,
    ]
    in_specs += [_const_spec(w) for w in weight_args]

    kernel = functools.partial(
        _encoder_kernel, n_features=len(feature_embeds),
        num_layers=L, num_heads=nh, head_dim=H // nh, hidden=H)

    return pl.pallas_call(
        kernel,
        out_shape=jax.ShapeDtypeStruct((batch * seq, out_dim), jnp.float32),
        grid=(batch,),
        in_specs=in_specs,
        out_specs=pl.BlockSpec((seq, out_dim), lambda b: (b, 0)),
        compiler_params=pltpu.CompilerParams(dimension_semantics=("parallel",)),
    )(x_emb, mask_bias, *feature_embeds, *weight_args)


# ----------------------------- parameter init / prep -----------------------------

def init_params(key, cfg):
    H, F = cfg["hidden"], cfg["ffn"]

    def nrm(k, shape, scale=0.02):
        return (scale * jax.random.normal(k, shape)).astype(jnp.float32)

    keys = iter(jax.random.split(key, 64))
    params = {
        "word_emb": nrm(next(keys), (cfg["vocab"], H)),
        "pos_emb": nrm(next(keys), (cfg["max_seq_len"], H)),
        "emb_ln_g": jnp.ones((H,), jnp.float32),
        "emb_ln_b": jnp.zeros((H,), jnp.float32),
        "layers": [],
        "dense_w": nrm(next(keys), (H, cfg["bert_out_dim"])),
        "dense_b": jnp.zeros((cfg["bert_out_dim"],), jnp.float32),
        # custom_embed=True -> nn.Parameter(torch.randn(feature_num, feature_dim))
        "feature_tables": [
            jax.random.normal(next(keys), (n, cfg["feature_dim"])).astype(jnp.float32)
            for n in cfg["features"]
        ],
    }
    for _ in range(cfg["num_layers"]):
        params["layers"].append({
            "wqkv": nrm(next(keys), (H, 3 * H)),            # fused Q|K|V projection
            "bqkv": jnp.zeros((3 * H,), jnp.float32),
            "wo": nrm(next(keys), (H, H)), "bo": jnp.zeros((H,), jnp.float32),
            "ln1_g": jnp.ones((H,), jnp.float32), "ln1_b": jnp.zeros((H,), jnp.float32),
            "w1": nrm(next(keys), (H, F)), "b1": jnp.zeros((F,), jnp.float32),
            "w2": nrm(next(keys), (F, H)), "b2": jnp.zeros((H,), jnp.float32),
            "ln2_g": jnp.ones((H,), jnp.float32), "ln2_b": jnp.zeros((H,), jnp.float32),
        })
    return params


def prepare_kernel_params(params, cfg):
    """Stack per-layer weights, fold attention scale, pre-cast matmul weights to bf16."""
    H, F, L = cfg["hidden"], cfg["ffn"], cfg["num_layers"]
    dh = H // cfg["heads"]
    scale = dh ** -0.5

    def stack(name):
        return jnp.stack([layer[name] for layer in params["layers"]])

    wqkv = stack("wqkv")                                     # (L, H, 3H)
    bqkv = stack("bqkv")                                     # (L, 3H)
    # fold 1/sqrt(head_dim) into the Q projection columns (done once, offline)
    wqkv = wqkv.at[:, :, :H].multiply(scale)
    bqkv = bqkv.at[:, :H].multiply(scale)

    N = cfg["bert_out_dim"]
    n_pad = max(128, ((N + 127) // 128) * 128)               # lane-dense only_bert store
    dw_pad = jnp.zeros((H, n_pad), jnp.float32).at[:, :N].set(params["dense_w"])
    db_pad = jnp.zeros((n_pad,), jnp.float32).at[:N].set(params["dense_b"])

    return {
        "emb_g": params["emb_ln_g"].reshape(1, H),
        "emb_b": params["emb_ln_b"].reshape(1, H),
        "wqkv": wqkv.astype(jnp.bfloat16),
        "bqkv": bqkv.reshape(L, 1, 3 * H),
        "wo": stack("wo").astype(jnp.bfloat16),
        "bo": stack("bo").reshape(L, 1, H),
        "ln1_g": stack("ln1_g").reshape(L, 1, H),
        "ln1_b": stack("ln1_b").reshape(L, 1, H),
        "w1": stack("w1").astype(jnp.bfloat16),
        "b1": stack("b1").reshape(L, 1, F),
        "w2": stack("w2").astype(jnp.bfloat16),
        "b2": stack("b2").reshape(L, 1, H),
        "ln2_g": stack("ln2_g").reshape(L, 1, H),
        "ln2_b": stack("ln2_b").reshape(L, 1, H),
        "dense_w": params["dense_w"].astype(jnp.bfloat16),
        "dense_b": params["dense_b"].reshape(1, N),
        "dense_w_pad": dw_pad.astype(jnp.bfloat16),
        "dense_b_pad": db_pad.reshape(1, n_pad),
    }


# ----------------------------- forward pass -----------------------------

def bert_encoder_forward(params, kparams, tokens, features, attention_mask, cfg,
                         only_bert=False):
    B, S = tokens.shape
    H = cfg["hidden"]

    # --- self.bert(tokens, attention_mask)[0]: embeddings (gathers stay in JAX glue) ---
    x = params["word_emb"][tokens] + params["pos_emb"][jnp.arange(S)][None, :, :]
    x = x.reshape(B * S, H).astype(jnp.float32)
    mask_bias = ((1.0 - attention_mask.astype(jnp.float32)) * -1e9).reshape(B, 1, S)

    # TODO(synk): bert_sequence_output_wrapper is undefined in the reference snippet; treated as identity.
    if only_bert:
        out = bert_encoder_fused(x, mask_bias, (), kparams, batch=B, seq=S, cfg=cfg,
                                 only_bert=True)
        return out[:, :cfg["bert_out_dim"]].reshape(B, S, cfg["bert_out_dim"])

    # custom_embed=True -> raw table indexing (gather stays in JAX glue)
    feature_embeds = tuple(
        tbl[f].reshape(B * S, -1)
        for tbl, f in zip(params["feature_tables"], features)
    )
    out = bert_encoder_fused(x, mask_bias, feature_embeds, kparams,
                             batch=B, seq=S, cfg=cfg)
    return out.reshape(B, S, cfg["out_dim"])


# ----------------------------- main -----------------------------

if __name__ == "__main__":
    cfg = {
        "vocab": 50,
        "max_seq_len": 512,
        "hidden": 128,          # bert_in_dim (scaled down from 768)
        "heads": 4,
        "ffn": 256,
        "num_layers": 2,
        "bert_out_dim": 64,     # scaled down from 256
        "feature_dim": 32,      # scaled down from 64
        "features": [6, 9],     # two categorical feature vocab sizes
        # out_dim = len(features)*feature_dim + bert_out_dim = 2*32 + 64 = 128
        "out_dim": 128,
    }
    assert cfg["out_dim"] == len(cfg["features"]) * cfg["feature_dim"] + cfg["bert_out_dim"]

    B, S = 2, 8
    root = jax.random.PRNGKey(0)
    k_par, k_tok, k_f0, k_f1 = jax.random.split(root, 4)

    params = init_params(k_par, cfg)
    kparams = prepare_kernel_params(params, cfg)

    tokens = jax.random.randint(k_tok, (B, S), 0, cfg["vocab"], dtype=jnp.int32)
    features = (
        jax.random.randint(k_f0, (B, S), 0, cfg["features"][0], dtype=jnp.int32),
        jax.random.randint(k_f1, (B, S), 0, cfg["features"][1], dtype=jnp.int32),
    )
    # batch 1 has two padded positions at the end
    attention_mask = jnp.ones((B, S), jnp.int32).at[1, -2:].set(0)

    fwd = jax.jit(functools.partial(bert_encoder_forward, cfg=cfg))
    out = fwd(params, kparams, tokens, features, attention_mask)
    out = jax.block_until_ready(out)

    assert out.shape == (B, S, cfg["out_dim"]), out.shape
    assert out.dtype == jnp.float32
    print("KERNEL_OK")
</pallas_src>

<mosaic_0001>
module attributes {stable_mosaic.version = 11 : i64} {
  func.func @_encoder_kernel(%arg0: i32, %arg1: memref<8x128xf32, #tpu.memory_space<vmem>>, %arg2: memref<1x1x8xf32, #tpu.memory_space<vmem>>, %arg3: memref<8x32xf32, #tpu.memory_space<vmem>>, %arg4: memref<8x32xf32, #tpu.memory_space<vmem>>, %arg5: memref<1x128xf32, #tpu.memory_space<vmem>>, %arg6: memref<1x128xf32, #tpu.memory_space<vmem>>, %arg7: memref<2x128x384xbf16, #tpu.memory_space<vmem>>, %arg8: memref<2x1x384xf32, #tpu.memory_space<vmem>>, %arg9: memref<2x128x128xbf16, #tpu.memory_space<vmem>>, %arg10: memref<2x1x128xf32, #tpu.memory_space<vmem>>, %arg11: memref<2x1x128xf32, #tpu.memory_space<vmem>>, %arg12: memref<2x1x128xf32, #tpu.memory_space<vmem>>, %arg13: memref<2x128x256xbf16, #tpu.memory_space<vmem>>, %arg14: memref<2x1x256xf32, #tpu.memory_space<vmem>>, %arg15: memref<2x256x128xbf16, #tpu.memory_space<vmem>>, %arg16: memref<2x1x128xf32, #tpu.memory_space<vmem>>, %arg17: memref<2x1x128xf32, #tpu.memory_space<vmem>>, %arg18: memref<2x1x128xf32, #tpu.memory_space<vmem>>, %arg19: memref<128x64xbf16, #tpu.memory_space<vmem>>, %arg20: memref<1x64xf32, #tpu.memory_space<vmem>>, %arg21: memref<8x128xf32, #tpu.memory_space<vmem>>) attributes {dimension_semantics = [#tpu.dimension_semantics<parallel>], iteration_bounds = array<i64: 2>, scalar_prefetch = 0 : i64, scratch_operands = 0 : i64, tpu.core_type = #tpu.core_type<tc>, window_params = [{transform_indices = @transform_0, window_bounds = array<i64: 8, 128>}, {transform_indices = @transform_1, window_bounds = array<i64: 1, 1, 8>}, {transform_indices = @transform_2, window_bounds = array<i64: 8, 32>}, {transform_indices = @transform_3, window_bounds = array<i64: 8, 32>}, {pipeline_mode = #tpu.pipeline_mode<synchronous>, transform_indices = @transform_4, window_bounds = array<i64: 1, 128>}, {pipeline_mode = #tpu.pipeline_mode<synchronous>, transform_indices = @transform_5, window_bounds = array<i64: 1, 128>}, {pipeline_mode = #tpu.pipeline_mode<synchronous>, transform_indices = @transform_6, window_bounds = array<i64: 2, 128, 384>}, {pipeline_mode = #tpu.pipeline_mode<synchronous>, transform_indices = @transform_7, window_bounds = array<i64: 2, 1, 384>}, {pipeline_mode = #tpu.pipeline_mode<synchronous>, transform_indices = @transform_8, window_bounds = array<i64: 2, 128, 128>}, {pipeline_mode = #tpu.pipeline_mode<synchronous>, transform_indices = @transform_9, window_bounds = array<i64: 2, 1, 128>}, {pipeline_mode = #tpu.pipeline_mode<synchronous>, transform_indices = @transform_10, window_bounds = array<i64: 2, 1, 128>}, {pipeline_mode = #tpu.pipeline_mode<synchronous>, transform_indices = @transform_11, window_bounds = array<i64: 2, 1, 128>}, {pipeline_mode = #tpu.pipeline_mode<synchronous>, transform_indices = @transform_12, window_bounds = array<i64: 2, 128, 256>}, {pipeline_mode = #tpu.pipeline_mode<synchronous>, transform_indices = @transform_13, window_bounds = array<i64: 2, 1, 256>}, {pipeline_mode = #tpu.pipeline_mode<synchronous>, transform_indices = @transform_14, window_bounds = array<i64: 2, 256, 128>}, {pipeline_mode = #tpu.pipeline_mode<synchronous>, transform_indices = @transform_15, window_bounds = array<i64: 2, 1, 128>}, {pipeline_mode = #tpu.pipeline_mode<synchronous>, transform_indices = @transform_16, window_bounds = array<i64: 2, 1, 128>}, {pipeline_mode = #tpu.pipeline_mode<synchronous>, transform_indices = @transform_17, window_bounds = array<i64: 2, 1, 128>}, {pipeline_mode = #tpu.pipeline_mode<synchronous>, transform_indices = @transform_18, window_bounds = array<i64: 128, 64>}, {pipeline_mode = #tpu.pipeline_mode<synchronous>, transform_indices = @transform_19, window_bounds = array<i64: 1, 64>}, {transform_indices = @transform_20, window_bounds = array<i64: 8, 128>}]} {
    %c0 = arith.constant 0 : index
    %c0_0 = arith.constant 0 : index
    %0 = vector.load %arg1[%c0, %c0_0] : memref<8x128xf32, #tpu.memory_space<vmem>>, vector<8x128xf32>
    %c0_1 = arith.constant 0 : index
    %c0_2 = arith.constant 0 : index
    %1 = vector.load %arg5[%c0_1, %c0_2] : memref<1x128xf32, #tpu.memory_space<vmem>>, vector<1x128xf32>
    %c0_3 = arith.constant 0 : index
    %c0_4 = arith.constant 0 : index
    %2 = vector.load %arg6[%c0_3, %c0_4] : memref<1x128xf32, #tpu.memory_space<vmem>>, vector<1x128xf32>
    %cst = arith.constant dense<0.000000e+00> : vector<8xf32>
    %3 = vector.multi_reduction <add>, %0, %cst [1] : vector<8x128xf32> to vector<8xf32>
    %4 = vector.shape_cast %3 : vector<8xf32> to vector<8x1xf32>
    %cst_5 = arith.constant 1.280000e+02 : f32
    %5 = vector.broadcast %cst_5 : f32 to vector<8x1xf32>
    %6 = arith.divf %4, %5 : vector<8x1xf32>
    %7 = vector.broadcast %6 : vector<8x1xf32> to vector<8x128xf32>
    %8 = arith.subf %0, %7 : vector<8x128xf32>
    %9 = arith.mulf %8, %8 : vector<8x128xf32>
    %cst_6 = arith.constant dense<0.000000e+00> : vector<8xf32>
    %10 = vector.multi_reduction <add>, %9, %cst_6 [1] : vector<8x128xf32> to vector<8xf32>
    %11 = vector.shape_cast %10 : vector<8xf32> to vector<8x1xf32>
    %cst_7 = arith.constant 1.280000e+02 : f32
    %12 = vector.broadcast %cst_7 : f32 to vector<8x1xf32>
    %13 = arith.divf %11, %12 : vector<8x1xf32>
    %14 = vector.broadcast %6 : vector<8x1xf32> to vector<8x128xf32>
    %15 = arith.subf %0, %14 : vector<8x128xf32>
    %cst_8 = arith.constant 9.99999996E-13 : f32
    %16 = vector.broadcast %cst_8 : f32 to vector<8x1xf32>
    %17 = arith.addf %13, %16 : vector<8x1xf32>
    %18 = math.rsqrt %17 : vector<8x1xf32>
    %19 = vector.broadcast %18 : vector<8x1xf32> to vector<8x128xf32>
    %20 = arith.mulf %15, %19 : vector<8x128xf32>
    %21 = vector.broadcast %1 : vector<1x128xf32> to vector<8x128xf32>
    %22 = arith.mulf %20, %21 : vector<8x128xf32>
    %23 = vector.broadcast %2 : vector<1x128xf32> to vector<8x128xf32>
    %24 = arith.addf %22, %23 : vector<8x128xf32>
    %c0_9 = arith.constant 0 : index
    %c0_10 = arith.constant 0 : index
    %c0_11 = arith.constant 0 : index
    %25 = vector.load %arg2[%c0_9, %c0_10, %c0_11] : memref<1x1x8xf32, #tpu.memory_space<vmem>>, vector<1x1x8xf32>
    %26 = vector.shape_cast %25 : vector<1x1x8xf32> to vector<1x8xf32>
    %c0_12 = arith.constant 0 : index
    %c0_13 = arith.constant 0 : index
    %c0_14 = arith.constant 0 : index
    %27 = vector.load %arg7[%c0_12, %c0_13, %c0_14] : memref<2x128x384xbf16, #tpu.memory_space<vmem>>, vector<1x128x384xbf16>
    %28 = vector.shape_cast %27 : vector<1x128x384xbf16> to vector<128x384xbf16>
    %29 = arith.truncf %24 : vector<8x128xf32> to vector<8x128xbf16>
    %cst_15 = arith.constant dense<0.000000e+00> : vector<8x384xf32>
    %30 = tpu.matmul %29, %28, %cst_15 {dimension_numbers = #tpu.dot_dimension_numbers<[1], [0], [0], [1], [0, 0, 1, 1], [], []>} : vector<8x128xbf16>, vector<128x384xbf16>, vector<8x384xf32> -> vector<8x384xf32>
    %c0_16 = arith.constant 0 : index
    %c0_17 = arith.constant 0 : index
    %c0_18 = arith.constant 0 : index
    %31 = vector.load %arg8[%c0_16, %c0_17, %c0_18] : memref<2x1x384xf32, #tpu.memory_space<vmem>>, vector<1x1x384xf32>
    %32 = vector.shape_cast %31 : vector<1x1x384xf32> to vector<1x384xf32>
    %33 = vector.broadcast %32 : vector<1x384xf32> to vector<8x384xf32>
    %34 = arith.addf %30, %33 : vector<8x384xf32>
    %35 = arith.truncf %34 : vector<8x384xf32> to vector<8x384xbf16>
    %36 = vector.extract_strided_slice %35 {offsets = [0, 0], sizes = [8, 32], strides = [1, 1]} : vector<8x384xbf16> to vector<8x32xbf16>
    %37 = vector.extract_strided_slice %35 {offsets = [0, 128], sizes = [8, 32], strides = [1, 1]} : vector<8x384xbf16> to vector<8x32xbf16>
    %38 = vector.extract_strided_slice %35 {offsets = [0, 256], sizes = [8, 32], strides = [1, 1]} : vector<8x384xbf16> to vector<8x32xbf16>
    %cst_19 = arith.constant dense<0.000000e+00> : vector<8x8xf32>
    %39 = tpu.matmul %36, %37, %cst_19 {dimension_numbers = #tpu.dot_dimension_numbers<[1], [1], [0], [0], [0, 0, 1, 0], [], []>} : vector<8x32xbf16>, vector<8x32xbf16>, vector<8x8xf32> -> vector<8x8xf32>
    %40 = vector.broadcast %26 : vector<1x8xf32> to vector<8x8xf32>
    %41 = arith.addf %39, %40 : vector<8x8xf32>
    %cst_20 = arith.constant dense<0xFF800000> : vector<8xf32>
    %42 = vector.multi_reduction <maximumf>, %41, %cst_20 [1] : vector<8x8xf32> to vector<8xf32>
    %43 = vector.shape_cast %42 : vector<8xf32> to vector<8x1xf32>
    %44 = vector.broadcast %43 : vector<8x1xf32> to vector<8x8xf32>
    %45 = arith.subf %41, %44 : vector<8x8xf32>
    %46 = math.exp %45 : vector<8x8xf32>
    %cst_21 = arith.constant dense<0.000000e+00> : vector<8xf32>
    %47 = vector.multi_reduction <add>, %46, %cst_21 [1] : vector<8x8xf32> to vector<8xf32>
    %48 = vector.shape_cast %47 : vector<8xf32> to vector<8x1xf32>
    %49 = tpu.reciprocal %48 {approx = true} : vector<8x1xf32> -> vector<8x1xf32>
    %50 = vector.broadcast %49 : vector<8x1xf32> to vector<8x8xf32>
    %51 = arith.mulf %46, %50 : vector<8x8xf32>
    %52 = arith.truncf %51 : vector<8x8xf32> to vector<8x8xbf16>
    %cst_22 = arith.constant dense<0.000000e+00> : vector<8x32xf32>
    %53 = tpu.matmul %52, %38, %cst_22 {dimension_numbers = #tpu.dot_dimension_numbers<[1], [0], [0], [1], [0, 0, 1, 1], [], []>} : vector<8x8xbf16>, vector<8x32xbf16>, vector<8x32xf32> -> vector<8x32xf32>
    %54 = vector.extract_strided_slice %35 {offsets = [0, 32], sizes = [8, 32], strides = [1, 1]} : vector<8x384xbf16> to vector<8x32xbf16>
    %55 = vector.extract_strided_slice %35 {offsets = [0, 160], sizes = [8, 32], strides = [1, 1]} : vector<8x384xbf16> to vector<8x32xbf16>
    %56 = vector.extract_strided_slice %35 {offsets = [0, 288], sizes = [8, 32], strides = [1, 1]} : vector<8x384xbf16> to vector<8x32xbf16>
    %cst_23 = arith.constant dense<0.000000e+00> : vector<8x8xf32>
    %57 = tpu.matmul %54, %55, %cst_23 {dimension_numbers = #tpu.dot_dimension_numbers<[1], [1], [0], [0], [0, 0, 1, 0], [], []>} : vector<8x32xbf16>, vector<8x32xbf16>, vector<8x8xf32> -> vector<8x8xf32>
    %58 = vector.broadcast %26 : vector<1x8xf32> to vector<8x8xf32>
    %59 = arith.addf %57, %58 : vector<8x8xf32>
    %cst_24 = arith.constant dense<0xFF800000> : vector<8xf32>
    %60 = vector.multi_reduction <maximumf>, %59, %cst_24 [1] : vector<8x8xf32> to vector<8xf32>
    %61 = vector.shape_cast %60 : vector<8xf32> to vector<8x1xf32>
    %62 = vector.broadcast %61 : vector<8x1xf32> to vector<8x8xf32>
    %63 = arith.subf %59, %62 : vector<8x8xf32>
    %64 = math.exp %63 : vector<8x8xf32>
    %cst_25 = arith.constant dense<0.000000e+00> : vector<8xf32>
    %65 = vector.multi_reduction <add>, %64, %cst_25 [1] : vector<8x8xf32> to vector<8xf32>
    %66 = vector.shape_cast %65 : vector<8xf32> to vector<8x1xf32>
    %67 = tpu.reciprocal %66 {approx = true} : vector<8x1xf32> -> vector<8x1xf32>
    %68 = vector.broadcast %67 : vector<8x1xf32> to vector<8x8xf32>
    %69 = arith.mulf %64, %68 : vector<8x8xf32>
    %70 = arith.truncf %69 : vector<8x8xf32> to vector<8x8xbf16>
    %cst_26 = arith.constant dense<0.000000e+00> : vector<8x32xf32>
    %71 = tpu.matmul %70, %56, %cst_26 {dimension_numbers = #tpu.dot_dimension_numbers<[1], [0], [0], [1], [0, 0, 1, 1], [], []>} : vector<8x8xbf16>, vector<8x32xbf16>, vector<8x32xf32> -> vector<8x32xf32>
    %72 = vector.extract_strided_slice %35 {offsets = [0, 64], sizes = [8, 32], strides = [1, 1]} : vector<8x384xbf16> to vector<8x32xbf16>
    %73 = vector.extract_strided_slice %35 {offsets = [0, 192], sizes = [8, 32], strides = [1, 1]} : vector<8x384xbf16> to vector<8x32xbf16>
    %74 = vector.extract_strided_slice %35 {offsets = [0, 320], sizes = [8, 32], strides = [1, 1]} : vector<8x384xbf16> to vector<8x32xbf16>
    %cst_27 = arith.constant dense<0.000000e+00> : vector<8x8xf32>
    %75 = tpu.matmul %72, %73, %cst_27 {dimension_numbers = #tpu.dot_dimension_numbers<[1], [1], [0], [0], [0, 0, 1, 0], [], []>} : vector<8x32xbf16>, vector<8x32xbf16>, vector<8x8xf32> -> vector<8x8xf32>
    %76 = vector.broadcast %26 : vector<1x8xf32> to vector<8x8xf32>
    %77 = arith.addf %75, %76 : vector<8x8xf32>
    %cst_28 = arith.constant dense<0xFF800000> : vector<8xf32>
    %78 = vector.multi_reduction <maximumf>, %77, %cst_28 [1] : vector<8x8xf32> to vector<8xf32>
    %79 = vector.shape_cast %78 : vector<8xf32> to vector<8x1xf32>
    %80 = vector.broadcast %79 : vector<8x1xf32> to vector<8x8xf32>
    %81 = arith.subf %77, %80 : vector<8x8xf32>
    %82 = math.exp %81 : vector<8x8xf32>
    %cst_29 = arith.constant dense<0.000000e+00> : vector<8xf32>
    %83 = vector.multi_reduction <add>, %82, %cst_29 [1] : vector<8x8xf32> to vector<8xf32>
    %84 = vector.shape_cast %83 : vector<8xf32> to vector<8x1xf32>
    %85 = tpu.reciprocal %84 {approx = true} : vector<8x1xf32> -> vector<8x1xf32>
    %86 = vector.broadcast %85 : vector<8x1xf32> to vector<8x8xf32>
    %87 = arith.mulf %82, %86 : vector<8x8xf32>
    %88 = arith.truncf %87 : vector<8x8xf32> to vector<8x8xbf16>
    %cst_30 = arith.constant dense<0.000000e+00> : vector<8x32xf32>
    %89 = tpu.matmul %88, %74, %cst_30 {dimension_numbers = #tpu.dot_dimension_numbers<[1], [0], [0], [1], [0, 0, 1, 1], [], []>} : vector<8x8xbf16>, vector<8x32xbf16>, vector<8x32xf32> -> vector<8x32xf32>
    %90 = vector.extract_strided_slice %35 {offsets = [0, 96], sizes = [8, 32], strides = [1, 1]} : vector<8x384xbf16> to vector<8x32xbf16>
    %91 = vector.extract_strided_slice %35 {offsets = [0, 224], sizes = [8, 32], strides = [1, 1]} : vector<8x384xbf16> to vector<8x32xbf16>
    %92 = vector.extract_strided_slice %35 {offsets = [0, 352], sizes = [8, 32], strides = [1, 1]} : vector<8x384xbf16> to vector<8x32xbf16>
    %cst_31 = arith.constant dense<0.000000e+00> : vector<8x8xf32>
    %93 = tpu.matmul %90, %91, %cst_31 {dimension_numbers = #tpu.dot_dimension_numbers<[1], [1], [0], [0], [0, 0, 1, 0], [], []>} : vector<8x32xbf16>, vector<8x32xbf16>, vector<8x8xf32> -> vector<8x8xf32>
    %94 = vector.broadcast %26 : vector<1x8xf32> to vector<8x8xf32>
    %95 = arith.addf %93, %94 : vector<8x8xf32>
    %cst_32 = arith.constant dense<0xFF800000> : vector<8xf32>
    %96 = vector.multi_reduction <maximumf>, %95, %cst_32 [1] : vector<8x8xf32> to vector<8xf32>
    %97 = vector.shape_cast %96 : vector<8xf32> to vector<8x1xf32>
    %98 = vector.broadcast %97 : vector<8x1xf32> to vector<8x8xf32>
    %99 = arith.subf %95, %98 : vector<8x8xf32>
    %100 = math.exp %99 : vector<8x8xf32>
    %cst_33 = arith.constant dense<0.000000e+00> : vector<8xf32>
    %101 = vector.multi_reduction <add>, %100, %cst_33 [1] : vector<8x8xf32> to vector<8xf32>
    %102 = vector.shape_cast %101 : vector<8xf32> to vector<8x1xf32>
    %103 = tpu.reciprocal %102 {approx = true} : vector<8x1xf32> -> vector<8x1xf32>
    %104 = vector.broadcast %103 : vector<8x1xf32> to vector<8x8xf32>
    %105 = arith.mulf %100, %104 : vector<8x8xf32>
    %106 = arith.truncf %105 : vector<8x8xf32> to vector<8x8xbf16>
    %cst_34 = arith.constant dense<0.000000e+00> : vector<8x32xf32>
    %107 = tpu.matmul %106, %92, %cst_34 {dimension_numbers = #tpu.dot_dimension_numbers<[1], [0], [0], [1], [0, 0, 1, 1], [], []>} : vector<8x8xbf16>, vector<8x32xbf16>, vector<8x32xf32> -> vector<8x32xf32>
    %108 = tpu.concatenate %53, %71, %89, %107 in 1 : vector<8x32xf32>, vector<8x32xf32>, vector<8x32xf32>, vector<8x32xf32> -> vector<8x128xf32>
    %c0_35 = arith.constant 0 : index
    %c0_36 = arith.constant 0 : index
    %c0_37 = arith.constant 0 : index
    %109 = vector.load %arg9[%c0_35, %c0_36, %c0_37] : memref<2x128x128xbf16, #tpu.memory_space<vmem>>, vector<1x128x128xbf16>
    %110 = vector.shape_cast %109 : vector<1x128x128xbf16> to vector<128x128xbf16>
    %111 = arith.truncf %108 : vector<8x128xf32> to vector<8x128xbf16>
    %cst_38 = arith.constant dense<0.000000e+00> : vector<8x128xf32>
    %112 = tpu.matmul %111, %110, %cst_38 {dimension_numbers = #tpu.dot_dimension_numbers<[1], [0], [0], [1], [0, 0, 1, 1], [], []>} : vector<8x128xbf16>, vector<128x128xbf16>, vector<8x128xf32> -> vector<8x128xf32>
    %c0_39 = arith.constant 0 : index
    %c0_40 = arith.constant 0 : index
    %c0_41 = arith.constant 0 : index
    %113 = vector.load %arg10[%c0_39, %c0_40, %c0_41] : memref<2x1x128xf32, #tpu.memory_space<vmem>>, vector<1x1x128xf32>
    %114 = vector.shape_cast %113 : vector<1x1x128xf32> to vector<1x128xf32>
    %115 = vector.broadcast %114 : vector<1x128xf32> to vector<8x128xf32>
    %116 = arith.addf %112, %115 : vector<8x128xf32>
    %117 = arith.addf %116, %24 : vector<8x128xf32>
    %c0_42 = arith.constant 0 : index
    %c0_43 = arith.constant 0 : index
    %c0_44 = arith.constant 0 : index
    %118 = vector.load %arg11[%c0_42, %c0_43, %c0_44] : memref<2x1x128xf32, #tpu.memory_space<vmem>>, vector<1x1x128xf32>
    %119 = vector.shape_cast %118 : vector<1x1x128xf32> to vector<1x128xf32>
    %c0_45 = arith.constant 0 : index
    %c0_46 = arith.constant 0 : index
    %c0_47 = arith.constant 0 : index
    %120 = vector.load %arg12[%c0_45, %c0_46, %c0_47] : memref<2x1x128xf32, #tpu.memory_space<vmem>>, vector<1x1x128xf32>
    %121 = vector.shape_cast %120 : vector<1x1x128xf32> to vector<1x128xf32>
    %cst_48 = arith.constant dense<0.000000e+00> : vector<8xf32>
    %122 = vector.multi_reduction <add>, %117, %cst_48 [1] : vector<8x128xf32> to vector<8xf32>
    %123 = vector.shape_cast %122 : vector<8xf32> to vector<8x1xf32>
    %cst_49 = arith.constant 1.280000e+02 : f32
    %124 = vector.broadcast %cst_49 : f32 to vector<8x1xf32>
    %125 = arith.divf %123, %124 : vector<8x1xf32>
    %126 = vector.broadcast %125 : vector<8x1xf32> to vector<8x128xf32>
    %127 = arith.subf %117, %126 : vector<8x128xf32>
    %128 = arith.mulf %127, %127 : vector<8x128xf32>
    %cst_50 = arith.constant dense<0.000000e+00> : vector<8xf32>
    %129 = vector.multi_reduction <add>, %128, %cst_50 [1] : vector<8x128xf32> to vector<8xf32>
    %130 = vector.shape_cast %129 : vector<8xf32> to vector<8x1xf32>
    %cst_51 = arith.constant 1.280000e+02 : f32
    %131 = vector.broadcast %cst_51 : f32 to vector<8x1xf32>
    %132 = arith.divf %130, %131 : vector<8x1xf32>
    %133 = vector.broadcast %125 : vector<8x1xf32> to vector<8x128xf32>
    %134 = arith.subf %117, %133 : vector<8x128xf32>
    %cst_52 = arith.constant 9.99999996E-13 : f32
    %135 = vector.broadcast %cst_52 : f32 to vector<8x1xf32>
    %136 = arith.addf %132, %135 : vector<8x1xf32>
    %137 = math.rsqrt %136 : vector<8x1xf32>
    %138 = vector.broadcast %137 : vector<8x1xf32> to vector<8x128xf32>
    %139 = arith.mulf %134, %138 : vector<8x128xf32>
    %140 = vector.broadcast %119 : vector<1x128xf32> to vector<8x128xf32>
    %141 = arith.mulf %139, %140 : vector<8x128xf32>
    %142 = vector.broadcast %121 : vector<1x128xf32> to vector<8x128xf32>
    %143 = arith.addf %141, %142 : vector<8x128xf32>
    %c0_53 = arith.constant 0 : index
    %c0_54 = arith.constant 0 : index
    %c0_55 = arith.constant 0 : index
    %144 = vector.load %arg13[%c0_53, %c0_54, %c0_55] : memref<2x128x256xbf16, #tpu.memory_space<vmem>>, vector<1x128x256xbf16>
    %145 = vector.shape_cast %144 : vector<1x128x256xbf16> to vector<128x256xbf16>
    %146 = arith.truncf %143 : vector<8x128xf32> to vector<8x128xbf16>
    %cst_56 = arith.constant dense<0.000000e+00> : vector<8x256xf32>
    %147 = tpu.matmul %146, %145, %cst_56 {dimension_numbers = #tpu.dot_dimension_numbers<[1], [0], [0], [1], [0, 0, 1, 1], [], []>} : vector<8x128xbf16>, vector<128x256xbf16>, vector<8x256xf32> -> vector<8x256xf32>
    %c0_57 = arith.constant 0 : index
    %c0_58 = arith.constant 0 : index
    %c0_59 = arith.constant 0 : index
    %148 = vector.load %arg14[%c0_57, %c0_58, %c0_59] : memref<2x1x256xf32, #tpu.memory_space<vmem>>, vector<1x1x256xf32>
    %149 = vector.shape_cast %148 : vector<1x1x256xf32> to vector<1x256xf32>
    %150 = vector.broadcast %149 : vector<1x256xf32> to vector<8x256xf32>
    %151 = arith.addf %147, %150 : vector<8x256xf32>
    %152 = arith.mulf %151, %151 : vector<8x256xf32>
    %153 = arith.mulf %151, %152 : vector<8x256xf32>
    %cst_60 = arith.constant 4.471500e-02 : f32
    %154 = vector.broadcast %cst_60 : f32 to vector<8x256xf32>
    %155 = arith.mulf %154, %153 : vector<8x256xf32>
    %156 = arith.addf %151, %155 : vector<8x256xf32>
    %cst_61 = arith.constant 0.797884583 : f32
    %157 = vector.broadcast %cst_61 : f32 to vector<8x256xf32>
    %158 = arith.mulf %157, %156 : vector<8x256xf32>
    %159 = math.tanh %158 : vector<8x256xf32>
    %cst_62 = arith.constant 1.000000e+00 : f32
    %160 = vector.broadcast %cst_62 : f32 to vector<8x256xf32>
    %161 = arith.addf %160, %159 : vector<8x256xf32>
    %cst_63 = arith.constant 5.000000e-01 : f32
    %162 = vector.broadcast %cst_63 : f32 to vector<8x256xf32>
    %163 = arith.mulf %162, %161 : vector<8x256xf32>
    %164 = arith.mulf %151, %163 : vector<8x256xf32>
    %c0_64 = arith.constant 0 : index
    %c0_65 = arith.constant 0 : index
    %c0_66 = arith.constant 0 : index
    %165 = vector.load %arg15[%c0_64, %c0_65, %c0_66] : memref<2x256x128xbf16, #tpu.memory_space<vmem>>, vector<1x256x128xbf16>
    %166 = vector.shape_cast %165 : vector<1x256x128xbf16> to vector<256x128xbf16>
    %167 = arith.truncf %164 : vector<8x256xf32> to vector<8x256xbf16>
    %cst_67 = arith.constant dense<0.000000e+00> : vector<8x128xf32>
    %168 = tpu.matmul %167, %166, %cst_67 {dimension_numbers = #tpu.dot_dimension_numbers<[1], [0], [0], [1], [0, 0, 1, 1], [], []>} : vector<8x256xbf16>, vector<256x128xbf16>, vector<8x128xf32> -> vector<8x128xf32>
    %c0_68 = arith.constant 0 : index
    %c0_69 = arith.constant 0 : index
    %c0_70 = arith.constant 0 : index
    %169 = vector.load %arg16[%c0_68, %c0_69, %c0_70] : memref<2x1x128xf32, #tpu.memory_space<vmem>>, vector<1x1x128xf32>
    %170 = vector.shape_cast %169 : vector<1x1x128xf32> to vector<1x128xf32>
    %171 = vector.broadcast %170 : vector<1x128xf32> to vector<8x128xf32>
    %172 = arith.addf %168, %171 : vector<8x128xf32>
    %173 = arith.addf %172, %143 : vector<8x128xf32>
    %c0_71 = arith.constant 0 : index
    %c0_72 = arith.constant 0 : index
    %c0_73 = arith.constant 0 : index
    %174 = vector.load %arg17[%c0_71, %c0_72, %c0_73] : memref<2x1x128xf32, #tpu.memory_space<vmem>>, vector<1x1x128xf32>
    %175 = vector.shape_cast %174 : vector<1x1x128xf32> to vector<1x128xf32>
    %c0_74 = arith.constant 0 : index
    %c0_75 = arith.constant 0 : index
    %c0_76 = arith.constant 0 : index
    %176 = vector.load %arg18[%c0_74, %c0_75, %c0_76] : memref<2x1x128xf32, #tpu.memory_space<vmem>>, vector<1x1x128xf32>
    %177 = vector.shape_cast %176 : vector<1x1x128xf32> to vector<1x128xf32>
    %cst_77 = arith.constant dense<0.000000e+00> : vector<8xf32>
    %178 = vector.multi_reduction <add>, %173, %cst_77 [1] : vector<8x128xf32> to vector<8xf32>
    %179 = vector.shape_cast %178 : vector<8xf32> to vector<8x1xf32>
    %cst_78 = arith.constant 1.280000e+02 : f32
    %180 = vector.broadcast %cst_78 : f32 to vector<8x1xf32>
    %181 = arith.divf %179, %180 : vector<8x1xf32>
    %182 = vector.broadcast %181 : vector<8x1xf32> to vector<8x128xf32>
    %183 = arith.subf %173, %182 : vector<8x128xf32>
    %184 = arith.mulf %183, %183 : vector<8x128xf32>
    %cst_79 = arith.constant dense<0.000000e+00> : vector<8xf32>
    %185 = vector.multi_reduction <add>, %184, %cst_79 [1] : vector<8x128xf32> to vector<8xf32>
    %186 = vector.shape_cast %185 : vector<8xf32> to vector<8x1xf32>
    %cst_80 = arith.constant 1.280000e+02 : f32
    %187 = vector.broadcast %cst_80 : f32 to vector<8x1xf32>
    %188 = arith.divf %186, %187 : vector<8x1xf32>
    %189 = vector.broadcast %181 : vector<8x1xf32> to vector<8x128xf32>
    %190 = arith.subf %173, %189 : vector<8x128xf32>
    %cst_81 = arith.constant 9.99999996E-13 : f32
    %191 = vector.broadcast %cst_81 : f32 to vector<8x1xf32>
    %192 = arith.addf %188, %191 : vector<8x1xf32>
    %193 = math.rsqrt %192 : vector<8x1xf32>
    %194 = vector.broadcast %193 : vector<8x1xf32> to vector<8x128xf32>
    %195 = arith.mulf %190, %194 : vector<8x128xf32>
    %196 = vector.broadcast %175 : vector<1x128xf32> to vector<8x128xf32>
    %197 = arith.mulf %195, %196 : vector<8x128xf32>
    %198 = vector.broadcast %177 : vector<1x128xf32> to vector<8x128xf32>
    %199 = arith.addf %197, %198 : vector<8x128xf32>
    %c1 = arith.constant 1 : index
    %c0_82 = arith.constant 0 : index
    %c0_83 = arith.constant 0 : index
    %200 = vector.load %arg7[%c1, %c0_82, %c0_83] : memref<2x128x384xbf16, #tpu.memory_space<vmem>>, vector<1x128x384xbf16>
    %201 = vector.shape_cast %200 : vector<1x128x384xbf16> to vector<128x384xbf16>
    %202 = arith.truncf %199 : vector<8x128xf32> to vector<8x128xbf16>
    %cst_84 = arith.constant dense<0.000000e+00> : vector<8x384xf32>
    %203 = tpu.matmul %202, %201, %cst_84 {dimension_numbers = #tpu.dot_dimension_numbers<[1], [0], [0], [1], [0, 0, 1, 1], [], []>} : vector<8x128xbf16>, vector<128x384xbf16>, vector<8x384xf32> -> vector<8x384xf32>
    %c1_85 = arith.constant 1 : index
    %c0_86 = arith.constant 0 : index
    %c0_87 = arith.constant 0 : index
    %204 = vector.load %arg8[%c1_85, %c0_86, %c0_87] : memref<2x1x384xf32, #tpu.memory_space<vmem>>, vector<1x1x384xf32>
    %205 = vector.shape_cast %204 : vector<1x1x384xf32> to vector<1x384xf32>
    %206 = vector.broadcast %205 : vector<1x384xf32> to vector<8x384xf32>
    %207 = arith.addf %203, %206 : vector<8x384xf32>
    %208 = arith.truncf %207 : vector<8x384xf32> to vector<8x384xbf16>
    %209 = vector.extract_strided_slice %208 {offsets = [0, 0], sizes = [8, 32], strides = [1, 1]} : vector<8x384xbf16> to vector<8x32xbf16>
    %210 = vector.extract_strided_slice %208 {offsets = [0, 128], sizes = [8, 32], strides = [1, 1]} : vector<8x384xbf16> to vector<8x32xbf16>
    %211 = vector.extract_strided_slice %208 {offsets = [0, 256], sizes = [8, 32], strides = [1, 1]} : vector<8x384xbf16> to vector<8x32xbf16>
    %cst_88 = arith.constant dense<0.000000e+00> : vector<8x8xf32>
    %212 = tpu.matmul %209, %210, %cst_88 {dimension_numbers = #tpu.dot_dimension_numbers<[1], [1], [0], [0], [0, 0, 1, 0], [], []>} : vector<8x32xbf16>, vector<8x32xbf16>, vector<8x8xf32> -> vector<8x8xf32>
    %213 = vector.broadcast %26 : vector<1x8xf32> to vector<8x8xf32>
    %214 = arith.addf %212, %213 : vector<8x8xf32>
    %cst_89 = arith.constant dense<0xFF800000> : vector<8xf32>
    %215 = vector.multi_reduction <maximumf>, %214, %cst_89 [1] : vector<8x8xf32> to vector<8xf32>
    %216 = vector.shape_cast %215 : vector<8xf32> to vector<8x1xf32>
    %217 = vector.broadcast %216 : vector<8x1xf32> to vector<8x8xf32>
    %218 = arith.subf %214, %217 : vector<8x8xf32>
    %219 = math.exp %218 : vector<8x8xf32>
    %cst_90 = arith.constant dense<0.000000e+00> : vector<8xf32>
    %220 = vector.multi_reduction <add>, %219, %cst_90 [1] : vector<8x8xf32> to vector<8xf32>
    %221 = vector.shape_cast %220 : vector<8xf32> to vector<8x1xf32>
    %222 = tpu.reciprocal %221 {approx = true} : vector<8x1xf32> -> vector<8x1xf32>
    %223 = vector.broadcast %222 : vector<8x1xf32> to vector<8x8xf32>
    %224 = arith.mulf %219, %223 : vector<8x8xf32>
    %225 = arith.truncf %224 : vector<8x8xf32> to vector<8x8xbf16>
    %cst_91 = arith.constant dense<0.000000e+00> : vector<8x32xf32>
    %226 = tpu.matmul %225, %211, %cst_91 {dimension_numbers = #tpu.dot_dimension_numbers<[1], [0], [0], [1], [0, 0, 1, 1], [], []>} : vector<8x8xbf16>, vector<8x32xbf16>, vector<8x32xf32> -> vector<8x32xf32>
    %227 = vector.extract_strided_slice %208 {offsets = [0, 32], sizes = [8, 32], strides = [1, 1]} : vector<8x384xbf16> to vector<8x32xbf16>
    %228 = vector.extract_strided_slice %208 {offsets = [0, 160], sizes = [8, 32], strides = [1, 1]} : vector<8x384xbf16> to vector<8x32xbf16>
    %229 = vector.extract_strided_slice %208 {offsets = [0, 288], sizes = [8, 32], strides = [1, 1]} : vector<8x384xbf16> to vector<8x32xbf16>
    %cst_92 = arith.constant dense<0.000000e+00> : vector<8x8xf32>
    %230 = tpu.matmul %227, %228, %cst_92 {dimension_numbers = #tpu.dot_dimension_numbers<[1], [1], [0], [0], [0, 0, 1, 0], [], []>} : vector<8x32xbf16>, vector<8x32xbf16>, vector<8x8xf32> -> vector<8x8xf32>
    %231 = vector.broadcast %26 : vector<1x8xf32> to vector<8x8xf32>
    %232 = arith.addf %230, %231 : vector<8x8xf32>
    %cst_93 = arith.constant dense<0xFF800000> : vector<8xf32>
    %233 = vector.multi_reduction <maximumf>, %232, %cst_93 [1] : vector<8x8xf32> to vector<8xf32>
    %234 = vector.shape_cast %233 : vector<8xf32> to vector<8x1xf32>
    %235 = vector.broadcast %234 : vector<8x1xf32> to vector<8x8xf32>
    %236 = arith.subf %232, %235 : vector<8x8xf32>
    %237 = math.exp %236 : vector<8x8xf32>
    %cst_94 = arith.constant dense<0.000000e+00> : vector<8xf32>
    %238 = vector.multi_reduction <add>, %237, %cst_94 [1] : vector<8x8xf32> to vector<8xf32>
    %239 = vector.shape_cast %238 : vector<8xf32> to vector<8x1xf32>
    %240 = tpu.reciprocal %239 {approx = true} : vector<8x1xf32> -> vector<8x1xf32>
    %241 = vector.broadcast %240 : vector<8x1xf32> to vector<8x8xf32>
    %242 = arith.mulf %237, %241 : vector<8x8xf32>
    %243 = arith.truncf %242 : vector<8x8xf32> to vector<8x8xbf16>
    %cst_95 = arith.constant dense<0.000000e+00> : vector<8x32xf32>
    %244 = tpu.matmul %243, %229, %cst_95 {dimension_numbers = #tpu.dot_dimension_numbers<[1], [0], [0], [1], [0, 0, 1, 1], [], []>} : vector<8x8xbf16>, vector<8x32xbf16>, vector<8x32xf32> -> vector<8x32xf32>
    %245 = vector.extract_strided_slice %208 {offsets = [0, 64], sizes = [8, 32], strides = [1, 1]} : vector<8x384xbf16> to vector<8x32xbf16>
    %246 = vector.extract_strided_slice %208 {offsets = [0, 192], sizes = [8, 32], strides = [1, 1]} : vector<8x384xbf16> to vector<8x32xbf16>
    %247 = vector.extract_strided_slice %208 {offsets = [0, 320], sizes = [8, 32], strides = [1, 1]} : vector<8x384xbf16> to vector<8x32xbf16>
    %cst_96 = arith.constant dense<0.000000e+00> : vector<8x8xf32>
    %248 = tpu.matmul %245, %246, %cst_96 {dimension_numbers = #tpu.dot_dimension_numbers<[1], [1], [0], [0], [0, 0, 1, 0], [], []>} : vector<8x32xbf16>, vector<8x32xbf16>, vector<8x8xf32> -> vector<8x8xf32>
    %249 = vector.broadcast %26 : vector<1x8xf32> to vector<8x8xf32>
    %250 = arith.addf %248, %249 : vector<8x8xf32>
    %cst_97 = arith.constant dense<0xFF800000> : vector<8xf32>
    %251 = vector.multi_reduction <maximumf>, %250, %cst_97 [1] : vector<8x8xf32> to vector<8xf32>
    %252 = vector.shape_cast %251 : vector<8xf32> to vector<8x1xf32>
    %253 = vector.broadcast %252 : vector<8x1xf32> to vector<8x8xf32>
    %254 = arith.subf %250, %253 : vector<8x8xf32>
    %255 = math.exp %254 : vector<8x8xf32>
    %cst_98 = arith.constant dense<0.000000e+00> : vector<8xf32>
    %256 = vector.multi_reduction <add>, %255, %cst_98 [1] : vector<8x8xf32> to vector<8xf32>
    %257 = vector.shape_cast %256 : vector<8xf32> to vector<8x1xf32>
    %258 = tpu.reciprocal %257 {approx = true} : vector<8x1xf32> -> vector<8x1xf32>
    %259 = vector.broadcast %258 : vector<8x1xf32> to vector<8x8xf32>
    %260 = arith.mulf %255, %259 : vector<8x8xf32>
    %261 = arith.truncf %260 : vector<8x8xf32> to vector<8x8xbf16>
    %cst_99 = arith.constant dense<0.000000e+00> : vector<8x32xf32>
    %262 = tpu.matmul %261, %247, %cst_99 {dimension_numbers = #tpu.dot_dimension_numbers<[1], [0], [0], [1], [0, 0, 1, 1], [], []>} : vector<8x8xbf16>, vector<8x32xbf16>, vector<8x32xf32> -> vector<8x32xf32>
    %263 = vector.extract_strided_slice %208 {offsets = [0, 96], sizes = [8, 32], strides = [1, 1]} : vector<8x384xbf16> to vector<8x32xbf16>
    %264 = vector.extract_strided_slice %208 {offsets = [0, 224], sizes = [8, 32], strides = [1, 1]} : vector<8x384xbf16> to vector<8x32xbf16>
    %265 = vector.extract_strided_slice %208 {offsets = [0, 352], sizes = [8, 32], strides = [1, 1]} : vector<8x384xbf16> to vector<8x32xbf16>
    %cst_100 = arith.constant dense<0.000000e+00> : vector<8x8xf32>
    %266 = tpu.matmul %263, %264, %cst_100 {dimension_numbers = #tpu.dot_dimension_numbers<[1], [1], [0], [0], [0, 0, 1, 0], [], []>} : vector<8x32xbf16>, vector<8x32xbf16>, vector<8x8xf32> -> vector<8x8xf32>
    %267 = vector.broadcast %26 : vector<1x8xf32> to vector<8x8xf32>
    %268 = arith.addf %266, %267 : vector<8x8xf32>
    %cst_101 = arith.constant dense<0xFF800000> : vector<8xf32>
    %269 = vector.multi_reduction <maximumf>, %268, %cst_101 [1] : vector<8x8xf32> to vector<8xf32>
    %270 = vector.shape_cast %269 : vector<8xf32> to vector<8x1xf32>
    %271 = vector.broadcast %270 : vector<8x1xf32> to vector<8x8xf32>
    %272 = arith.subf %268, %271 : vector<8x8xf32>
    %273 = math.exp %272 : vector<8x8xf32>
    %cst_102 = arith.constant dense<0.000000e+00> : vector<8xf32>
    %274 = vector.multi_reduction <add>, %273, %cst_102 [1] : vector<8x8xf32> to vector<8xf32>
    %275 = vector.shape_cast %274 : vector<8xf32> to vector<8x1xf32>
    %276 = tpu.reciprocal %275 {approx = true} : vector<8x1xf32> -> vector<8x1xf32>
    %277 = vector.broadcast %276 : vector<8x1xf32> to vector<8x8xf32>
    %278 = arith.mulf %273, %277 : vector<8x8xf32>
    %279 = arith.truncf %278 : vector<8x8xf32> to vector<8x8xbf16>
    %cst_103 = arith.constant dense<0.000000e+00> : vector<8x32xf32>
    %280 = tpu.matmul %279, %265, %cst_103 {dimension_numbers = #tpu.dot_dimension_numbers<[1], [0], [0], [1], [0, 0, 1, 1], [], []>} : vector<8x8xbf16>, vector<8x32xbf16>, vector<8x32xf32> -> vector<8x32xf32>
    %281 = tpu.concatenate %226, %244, %262, %280 in 1 : vector<8x32xf32>, vector<8x32xf32>, vector<8x32xf32>, vector<8x32xf32> -> vector<8x128xf32>
    %c1_104 = arith.constant 1 : index
    %c0_105 = arith.constant 0 : index
    %c0_106 = arith.constant 0 : index
    %282 = vector.load %arg9[%c1_104, %c0_105, %c0_106] : memref<2x128x128xbf16, #tpu.memory_space<vmem>>, vector<1x128x128xbf16>
    %283 = vector.shape_cast %282 : vector<1x128x128xbf16> to vector<128x128xbf16>
    %284 = arith.truncf %281 : vector<8x128xf32> to vector<8x128xbf16>
    %cst_107 = arith.constant dense<0.000000e+00> : vector<8x128xf32>
    %285 = tpu.matmul %284, %283, %cst_107 {dimension_numbers = #tpu.dot_dimension_numbers<[1], [0], [0], [1], [0, 0, 1, 1], [], []>} : vector<8x128xbf16>, vector<128x128xbf16>, vector<8x128xf32> -> vector<8x128xf32>
    %c1_108 = arith.constant 1 : index
    %c0_109 = arith.constant 0 : index
    %c0_110 = arith.constant 0 : index
    %286 = vector.load %arg10[%c1_108, %c0_109, %c0_110] : memref<2x1x128xf32, #tpu.memory_space<vmem>>, vector<1x1x128xf32>
    %287 = vector.shape_cast %286 : vector<1x1x128xf32> to vector<1x128xf32>
    %288 = vector.broadcast %287 : vector<1x128xf32> to vector<8x128xf32>
    %289 = arith.addf %285, %288 : vector<8x128xf32>
    %290 = arith.addf %289, %199 : vector<8x128xf32>
    %c1_111 = arith.constant 1 : index
    %c0_112 = arith.constant 0 : index
    %c0_113 = arith.constant 0 : index
    %291 = vector.load %arg11[%c1_111, %c0_112, %c0_113] : memref<2x1x128xf32, #tpu.memory_space<vmem>>, vector<1x1x128xf32>
    %292 = vector.shape_cast %291 : vector<1x1x128xf32> to vector<1x128xf32>
    %c1_114 = arith.constant 1 : index
    %c0_115 = arith.constant 0 : index
    %c0_116 = arith.constant 0 : index
    %293 = vector.load %arg12[%c1_114, %c0_115, %c0_116] : memref<2x1x128xf32, #tpu.memory_space<vmem>>, vector<1x1x128xf32>
    %294 = vector.shape_cast %293 : vector<1x1x128xf32> to vector<1x128xf32>
    %cst_117 = arith.constant dense<0.000000e+00> : vector<8xf32>
    %295 = vector.multi_reduction <add>, %290, %cst_117 [1] : vector<8x128xf32> to vector<8xf32>
    %296 = vector.shape_cast %295 : vector<8xf32> to vector<8x1xf32>
    %cst_118 = arith.constant 1.280000e+02 : f32
    %297 = vector.broadcast %cst_118 : f32 to vector<8x1xf32>
    %298 = arith.divf %296, %297 : vector<8x1xf32>
    %299 = vector.broadcast %298 : vector<8x1xf32> to vector<8x128xf32>
    %300 = arith.subf %290, %299 : vector<8x128xf32>
    %301 = arith.mulf %300, %300 : vector<8x128xf32>
    %cst_119 = arith.constant dense<0.000000e+00> : vector<8xf32>
    %302 = vector.multi_reduction <add>, %301, %cst_119 [1] : vector<8x128xf32> to vector<8xf32>
    %303 = vector.shape_cast %302 : vector<8xf32> to vector<8x1xf32>
    %cst_120 = arith.constant 1.280000e+02 : f32
    %304 = vector.broadcast %cst_120 : f32 to vector<8x1xf32>
    %305 = arith.divf %303, %304 : vector<8x1xf32>
    %306 = vector.broadcast %298 : vector<8x1xf32> to vector<8x128xf32>
    %307 = arith.subf %290, %306 : vector<8x128xf32>
    %cst_121 = arith.constant 9.99999996E-13 : f32
    %308 = vector.broadcast %cst_121 : f32 to vector<8x1xf32>
    %309 = arith.addf %305, %308 : vector<8x1xf32>
    %310 = math.rsqrt %309 : vector<8x1xf32>
    %311 = vector.broadcast %310 : vector<8x1xf32> to vector<8x128xf32>
    %312 = arith.mulf %307, %311 : vector<8x128xf32>
    %313 = vector.broadcast %292 : vector<1x128xf32> to vector<8x128xf32>
    %314 = arith.mulf %312, %313 : vector<8x128xf32>
    %315 = vector.broadcast %294 : vector<1x128xf32> to vector<8x128xf32>
    %316 = arith.addf %314, %315 : vector<8x128xf32>
    %c1_122 = arith.constant 1 : index
    %c0_123 = arith.constant 0 : index
    %c0_124 = arith.constant 0 : index
    %317 = vector.load %arg13[%c1_122, %c0_123, %c0_124] : memref<2x128x256xbf16, #tpu.memory_space<vmem>>, vector<1x128x256xbf16>
    %318 = vector.shape_cast %317 : vector<1x128x256xbf16> to vector<128x256xbf16>
    %319 = arith.truncf %316 : vector<8x128xf32> to vector<8x128xbf16>
    %cst_125 = arith.constant dense<0.000000e+00> : vector<8x256xf32>
    %320 = tpu.matmul %319, %318, %cst_125 {dimension_numbers = #tpu.dot_dimension_numbers<[1], [0], [0], [1], [0, 0, 1, 1], [], []>} : vector<8x128xbf16>, vector<128x256xbf16>, vector<8x256xf32> -> vector<8x256xf32>
    %c1_126 = arith.constant 1 : index
    %c0_127 = arith.constant 0 : index
    %c0_128 = arith.constant 0 : index
    %321 = vector.load %arg14[%c1_126, %c0_127, %c0_128] : memref<2x1x256xf32, #tpu.memory_space<vmem>>, vector<1x1x256xf32>
    %322 = vector.shape_cast %321 : vector<1x1x256xf32> to vector<1x256xf32>
    %323 = vector.broadcast %322 : vector<1x256xf32> to vector<8x256xf32>
    %324 = arith.addf %320, %323 : vector<8x256xf32>
    %325 = arith.mulf %324, %324 : vector<8x256xf32>
    %326 = arith.mulf %324, %325 : vector<8x256xf32>
    %cst_129 = arith.constant 4.471500e-02 : f32
    %327 = vector.broadcast %cst_129 : f32 to vector<8x256xf32>
    %328 = arith.mulf %327, %326 : vector<8x256xf32>
    %329 = arith.addf %324, %328 : vector<8x256xf32>
    %cst_130 = arith.constant 0.797884583 : f32
    %330 = vector.broadcast %cst_130 : f32 to vector<8x256xf32>
    %331 = arith.mulf %330, %329 : vector<8x256xf32>
    %332 = math.tanh %331 : vector<8x256xf32>
    %cst_131 = arith.constant 1.000000e+00 : f32
    %333 = vector.broadcast %cst_131 : f32 to vector<8x256xf32>
    %334 = arith.addf %333, %332 : vector<8x256xf32>
    %cst_132 = arith.constant 5.000000e-01 : f32
    %335 = vector.broadcast %cst_132 : f32 to vector<8x256xf32>
    %336 = arith.mulf %335, %334 : vector<8x256xf32>
    %337 = arith.mulf %324, %336 : vector<8x256xf32>
    %c1_133 = arith.constant 1 : index
    %c0_134 = arith.constant 0 : index
    %c0_135 = arith.constant 0 : index
    %338 = vector.load %arg15[%c1_133, %c0_134, %c0_135] : memref<2x256x128xbf16, #tpu.memory_space<vmem>>, vector<1x256x128xbf16>
    %339 = vector.shape_cast %338 : vector<1x256x128xbf16> to vector<256x128xbf16>
    %340 = arith.truncf %337 : vector<8x256xf32> to vector<8x256xbf16>
    %cst_136 = arith.constant dense<0.000000e+00> : vector<8x128xf32>
    %341 = tpu.matmul %340, %339, %cst_136 {dimension_numbers = #tpu.dot_dimension_numbers<[1], [0], [0], [1], [0, 0, 1, 1], [], []>} : vector<8x256xbf16>, vector<256x128xbf16>, vector<8x128xf32> -> vector<8x128xf32>
    %c1_137 = arith.constant 1 : index
    %c0_138 = arith.constant 0 : index
    %c0_139 = arith.constant 0 : index
    %342 = vector.load %arg16[%c1_137, %c0_138, %c0_139] : memref<2x1x128xf32, #tpu.memory_space<vmem>>, vector<1x1x128xf32>
    %343 = vector.shape_cast %342 : vector<1x1x128xf32> to vector<1x128xf32>
    %344 = vector.broadcast %343 : vector<1x128xf32> to vector<8x128xf32>
    %345 = arith.addf %341, %344 : vector<8x128xf32>
    %346 = arith.addf %345, %316 : vector<8x128xf32>
    %c1_140 = arith.constant 1 : index
    %c0_141 = arith.constant 0 : index
    %c0_142 = arith.constant 0 : index
    %347 = vector.load %arg17[%c1_140, %c0_141, %c0_142] : memref<2x1x128xf32, #tpu.memory_space<vmem>>, vector<1x1x128xf32>
    %348 = vector.shape_cast %347 : vector<1x1x128xf32> to vector<1x128xf32>
    %c1_143 = arith.constant 1 : index
    %c0_144 = arith.constant 0 : index
    %c0_145 = arith.constant 0 : index
    %349 = vector.load %arg18[%c1_143, %c0_144, %c0_145] : memref<2x1x128xf32, #tpu.memory_space<vmem>>, vector<1x1x128xf32>
    %350 = vector.shape_cast %349 : vector<1x1x128xf32> to vector<1x128xf32>
    %cst_146 = arith.constant dense<0.000000e+00> : vector<8xf32>
    %351 = vector.multi_reduction <add>, %346, %cst_146 [1] : vector<8x128xf32> to vector<8xf32>
    %352 = vector.shape_cast %351 : vector<8xf32> to vector<8x1xf32>
    %cst_147 = arith.constant 1.280000e+02 : f32
    %353 = vector.broadcast %cst_147 : f32 to vector<8x1xf32>
    %354 = arith.divf %352, %353 : vector<8x1xf32>
    %355 = vector.broadcast %354 : vector<8x1xf32> to vector<8x128xf32>
    %356 = arith.subf %346, %355 : vector<8x128xf32>
    %357 = arith.mulf %356, %356 : vector<8x128xf32>
    %cst_148 = arith.constant dense<0.000000e+00> : vector<8xf32>
    %358 = vector.multi_reduction <add>, %357, %cst_148 [1] : vector<8x128xf32> to vector<8xf32>
    %359 = vector.shape_cast %358 : vector<8xf32> to vector<8x1xf32>
    %cst_149 = arith.constant 1.280000e+02 : f32
    %360 = vector.broadcast %cst_149 : f32 to vector<8x1xf32>
    %361 = arith.divf %359, %360 : vector<8x1xf32>
    %362 = vector.broadcast %354 : vector<8x1xf32> to vector<8x128xf32>
    %363 = arith.subf %346, %362 : vector<8x128xf32>
    %cst_150 = arith.constant 9.99999996E-13 : f32
    %364 = vector.broadcast %cst_150 : f32 to vector<8x1xf32>
    %365 = arith.addf %361, %364 : vector<8x1xf32>
    %366 = math.rsqrt %365 : vector<8x1xf32>
    %367 = vector.broadcast %366 : vector<8x1xf32> to vector<8x128xf32>
    %368 = arith.mulf %363, %367 : vector<8x128xf32>
    %369 = vector.broadcast %348 : vector<1x128xf32> to vector<8x128xf32>
    %370 = arith.mulf %368, %369 : vector<8x128xf32>
    %371 = vector.broadcast %350 : vector<1x128xf32> to vector<8x128xf32>
    %372 = arith.addf %370, %371 : vector<8x128xf32>
    %c0_151 = arith.constant 0 : index
    %c0_152 = arith.constant 0 : index
    %373 = vector.load %arg19[%c0_151, %c0_152] : memref<128x64xbf16, #tpu.memory_space<vmem>>, vector<128x64xbf16>
    %374 = arith.truncf %372 : vector<8x128xf32> to vector<8x128xbf16>
    %cst_153 = arith.constant dense<0.000000e+00> : vector<8x64xf32>
    %375 = tpu.matmul %374, %373, %cst_153 {dimension_numbers = #tpu.dot_dimension_numbers<[1], [0], [0], [1], [0, 0, 1, 1], [], []>} : vector<8x128xbf16>, vector<128x64xbf16>, vector<8x64xf32> -> vector<8x64xf32>
    %c0_154 = arith.constant 0 : index
    %c0_155 = arith.constant 0 : index
    %376 = vector.load %arg20[%c0_154, %c0_155] : memref<1x64xf32, #tpu.memory_space<vmem>>, vector<1x64xf32>
    %377 = vector.broadcast %376 : vector<1x64xf32> to vector<8x64xf32>
    %378 = arith.addf %375, %377 : vector<8x64xf32>
    %c0_156 = arith.constant 0 : index
    %c0_157 = arith.constant 0 : index
    %379 = vector.load %arg3[%c0_156, %c0_157] : memref<8x32xf32, #tpu.memory_space<vmem>>, vector<8x32xf32>
    %c0_158 = arith.constant 0 : index
    %c0_159 = arith.constant 0 : index
    %380 = vector.load %arg4[%c0_158, %c0_159] : memref<8x32xf32, #tpu.memory_space<vmem>>, vector<8x32xf32>
    %381 = tpu.concatenate %378, %379, %380 in 1 : vector<8x64xf32>, vector<8x32xf32>, vector<8x32xf32> -> vector<8x128xf32>
    %c0_160 = arith.constant 0 : index
    %c0_161 = arith.constant 0 : index
    %382 = vector.load %arg21[%c0_160, %c0_161] : memref<8x128xf32, #tpu.memory_space<vmem>>, vector<8x128xf32>
    tpu.vector_store %arg21[%c0_160, %c0_161], %381 {strides = array<i32>} : memref<8x128xf32, #tpu.memory_space<vmem>>, vector<8x128xf32>,
    return
  }
  func.func @transform_0(%arg0: i32) -> (i32, i32) {
    %c0_i32 = arith.constant 0 : i32
    %c0_i32_0 = arith.constant 0 : i32
    return %arg0, %c0_i32 : i32, i32
  }
  func.func @transform_1(%arg0: i32) -> (i32, i32, i32) {
    %c0_i32 = arith.constant 0 : i32
    %c0_i32_0 = arith.constant 0 : i32
    %c0_i32_1 = arith.constant 0 : i32
    return %arg0, %c0_i32, %c0_i32_0 : i32, i32, i32
  }
  func.func @transform_2(%arg0: i32) -> (i32, i32) {
    %c0_i32 = arith.constant 0 : i32
    %c0_i32_0 = arith.constant 0 : i32
    return %arg0, %c0_i32 : i32, i32
  }
  func.func @transform_3(%arg0: i32) -> (i32, i32) {
    %c0_i32 = arith.constant 0 : i32
    %c0_i32_0 = arith.constant 0 : i32
    return %arg0, %c0_i32 : i32, i32
  }
  func.func @transform_4(%arg0: i32) -> (i32, i32) {
    %c0_i32 = arith.constant 0 : i32
    %c0_i32_0 = arith.constant 0 : i32
    %c0_i32_1 = arith.constant 0 : i32
    return %c0_i32, %c0_i32_0 : i32, i32
  }
  func.func @transform_5(%arg0: i32) -> (i32, i32) {
    %c0_i32 = arith.constant 0 : i32
    %c0_i32_0 = arith.constant 0 : i32
    %c0_i32_1 = arith.constant 0 : i32
    return %c0_i32, %c0_i32_0 : i32, i32
  }
  func.func @transform_6(%arg0: i32) -> (i32, i32, i32) {
    %c0_i32 = arith.constant 0 : i32
    %c0_i32_0 = arith.constant 0 : i32
    %c0_i32_1 = arith.constant 0 : i32
    %c0_i32_2 = arith.constant 0 : i32
    return %c0_i32, %c0_i32_0, %c0_i32_1 : i32, i32, i32
  }
  func.func @transform_7(%arg0: i32) -> (i32, i32, i32) {
    %c0_i32 = arith.constant 0 : i32
    %c0_i32_0 = arith.constant 0 : i32
    %c0_i32_1 = arith.constant 0 : i32
    %c0_i32_2 = arith.constant 0 : i32
    return %c0_i32, %c0_i32_0, %c0_i32_1 : i32, i32, i32
  }
  func.func @transform_8(%arg0: i32) -> (i32, i32, i32) {
    %c0_i32 = arith.constant 0 : i32
    %c0_i32_0 = arith.constant 0 : i32
    %c0_i32_1 = arith.constant 0 : i32
    %c0_i32_2 = arith.constant 0 : i32
    return %c0_i32, %c0_i32_0, %c0_i32_1 : i32, i32, i32
  }
  func.func @transform_9(%arg0: i32) -> (i32, i32, i32) {
    %c0_i32 = arith.constant 0 : i32
    %c0_i32_0 = arith.constant 0 : i32
    %c0_i32_1 = arith.constant 0 : i32
    %c0_i32_2 = arith.constant 0 : i32
    return %c0_i32, %c0_i32_0, %c0_i32_1 : i32, i32, i32
  }
  func.func @transform_10(%arg0: i32) -> (i32, i32, i32) {
    %c0_i32 = arith.constant 0 : i32
    %c0_i32_0 = arith.constant 0 : i32
    %c0_i32_1 = arith.constant 0 : i32
    %c0_i32_2 = arith.constant 0 : i32
    return %c0_i32, %c0_i32_0, %c0_i32_1 : i32, i32, i32
  }
  func.func @transform_11(%arg0: i32) -> (i32, i32, i32) {
    %c0_i32 = arith.constant 0 : i32
    %c0_i32_0 = arith.constant 0 : i32
    %c0_i32_1 = arith.constant 0 : i32
    %c0_i32_2 = arith.constant 0 : i32
    return %c0_i32, %c0_i32_0, %c0_i32_1 : i32, i32, i32
  }
  func.func @transform_12(%arg0: i32) -> (i32, i32, i32) {
    %c0_i32 = arith.constant 0 : i32
    %c0_i32_0 = arith.constant 0 : i32
    %c0_i32_1 = arith.constant 0 : i32
    %c0_i32_2 = arith.constant 0 : i32
    return %c0_i32, %c0_i32_0, %c0_i32_1 : i32, i32, i32
  }
  func.func @transform_13(%arg0: i32) -> (i32, i32, i32) {
    %c0_i32 = arith.constant 0 : i32
    %c0_i32_0 = arith.constant 0 : i32
    %c0_i32_1 = arith.constant 0 : i32
    %c0_i32_2 = arith.constant 0 : i32
    return %c0_i32, %c0_i32_0, %c0_i32_1 : i32, i32, i32
  }
  func.func @transform_14(%arg0: i32) -> (i32, i32, i32) {
    %c0_i32 = arith.constant 0 : i32
    %c0_i32_0 = arith.constant 0 : i32
    %c0_i32_1 = arith.constant 0 : i32
    %c0_i32_2 = arith.constant 0 : i32
    return %c0_i32, %c0_i32_0, %c0_i32_1 : i32, i32, i32
  }
  func.func @transform_15(%arg0: i32) -> (i32, i32, i32) {
    %c0_i32 = arith.constant 0 : i32
    %c0_i32_0 = arith.constant 0 : i32
    %c0_i32_1 = arith.constant 0 : i32
    %c0_i32_2 = arith.constant 0 : i32
    return %c0_i32, %c0_i32_0, %c0_i32_1 : i32, i32, i32
  }
  func.func @transform_16(%arg0: i32) -> (i32, i32, i32) {
    %c0_i32 = arith.constant 0 : i32
    %c0_i32_0 = arith.constant 0 : i32
    %c0_i32_1 = arith.constant 0 : i32
    %c0_i32_2 = arith.constant 0 : i32
    return %c0_i32, %c0_i32_0, %c0_i32_1 : i32, i32, i32
  }
  func.func @transform_17(%arg0: i32) -> (i32, i32, i32) {
    %c0_i32 = arith.constant 0 : i32
    %c0_i32_0 = arith.constant 0 : i32
    %c0_i32_1 = arith.constant 0 : i32
    %c0_i32_2 = arith.constant 0 : i32
    return %c0_i32, %c0_i32_0, %c0_i32_1 : i32, i32, i32
  }
  func.func @transform_18(%arg0: i32) -> (i32, i32) {
    %c0_i32 = arith.constant 0 : i32
    %c0_i32_0 = arith.constant 0 : i32
    %c0_i32_1 = arith.constant 0 : i32
    return %c0_i32, %c0_i32_0 : i32, i32
  }
  func.func @transform_19(%arg0: i32) -> (i32, i32) {
    %c0_i32 = arith.constant 0 : i32
    %c0_i32_0 = arith.constant 0 : i32
    %c0_i32_1 = arith.constant 0 : i32
    return %c0_i32, %c0_i32_0 : i32, i32
  }
  func.func @transform_20(%arg0: i32) -> (i32, i32) {
    %c0_i32 = arith.constant 0 : i32
    %c0_i32_0 = arith.constant 0 : i32
    return %arg0, %c0_i32 : i32, i32
  }
}

</mosaic_0001>

<bundles_post_ra>
// kernel: bert_encoder_forward.1
= control target key start
LH: loop header
LB: loop body
LE: loop exit
PB: predicated region body
PF: predicated region fallthrough
CT: control target
= control target key end

     0   :  { %s5166_s0 = inlined_call_operand.vmem [shape: f32[16,128], index: 0, kind: input, shape index: {}]   ;;  %s5167_s1 = inlined_call_operand.vmem [shape: f32[2,1,8], index: 1, kind: input, shape index: {}]   ;;  %s5168_s2 = inlined_call_operand.vmem [shape: f32[16,32], index: 2, kind: input, shape index: {}]   ;;  %s5169_s3 = inlined_call_operand.vmem [shape: f32[16,32], index: 3, kind: input, shape index: {}]   ;;  %s5170_s4 = inlined_call_operand.vmem [shape: f32[1,128], index: 4, kind: input, shape index: {}]   ;;  %s5171_s5 = inlined_call_operand.vmem [shape: f32[1,128], index: 5, kind: input, shape index: {}]   ;;  %s5172_s6 = inlined_call_operand.hbm [shape: bf16[2,128,384], index: 6, kind: input, shape index: {}]   ;;  %s5173_s7 = inlined_call_operand.vmem [shape: f32[2,1,384], index: 7, kind: input, shape index: {}]   ;;  %s5174_s8 = inlined_call_operand.vmem [shape: bf16[2,128,128], index: 8, kind: input, shape index: {}]   ;;  %s5175_s9 = inlined_call_operand.vmem [shape: f32[2,1,128], index: 9, kind: input, shape index: {}]   ;;  %s5176_s10 = inlined_call_operand.vmem [shape: f32[2,1,128], index: 10, kind: input, shape index: {}]   ;;  %s5177_s11 = inlined_call_operand.vmem [shape: f32[2,1,128], index: 11, kind: input, shape index: {}]   ;;  %s5178_s12 = inlined_call_operand.vmem [shape: bf16[2,128,256], index: 12, kind: input, shape index: {}]   ;;  %s5179_s13 = inlined_call_operand.vmem [shape: f32[2,1,256], index: 13, kind: input, shape index: {}]   ;;  %s5180_s14 = inlined_call_operand.hbm [shape: bf16[2,256,128], index: 14, kind: input, shape index: {}]   ;;  %s5181_s15 = inlined_call_operand.vmem [shape: f32[2,1,128], index: 15, kind: input, shape index: {}]   ;;  %s5182_s16 = inlined_call_operand.vmem [shape: f32[2,1,128], index: 16, kind: input, shape index: {}]   ;;  %s5183_s17 = inlined_call_operand.vmem [shape: f32[2,1,128], index: 17, kind: input, shape index: {}]   ;;  %s5184_s18 = inlined_call_operand.vmem [shape: bf16[128,64], index: 18, kind: input, shape index: {}]   ;;  %s5185_s19 = inlined_call_operand.vmem [shape: f32[1,64], index: 19, kind: input, shape index: {}]   ;;  %s5186_s20 = inlined_call_operand.hbm [shape: f32[16,128], index: 20, kind: output, shape index: {}]  }
   0x1   :  { %5199 = sst [smem:[#allocation17_spill]] %s5166_s0 }
   0x2   :  { %5200 = sst [smem:[#allocation18_spill]] %s5167_s1 }
   0x3   :  { %5201 = sst [smem:[#allocation19_spill]] %s5168_s2 }
   0x4   :  { %5202 = sst [smem:[#allocation20_spill]] %s5169_s3 }
   0x5   :  { %5203 = sst [smem:[#allocation21_spill]] %s5170_s4 }
   0x6   :  { %5204 = sst [smem:[#allocation22_spill]] %s5186_s20 }
   0x7   :  { %25 = vsyncpa [#allocation3], 0 }
   0x8   :  { %26 = vsyncpa [#allocation6], 0 }
   0x9   :  { %27 = vsyncpa [#allocation4], 0 }
   0xa   :  { %29 = vsyncpa [#allocation4 + $0x1], 0  ;;  %s4533_s1 = smov 0   ;;  %s4535_s22 = smov 0  }
   0xb   :  { %s4537_s23 = smov 0   ;;  %s4539_s24 = smov 0  }
   0xc LB: > { %5205 = sst [smem:[#allocation11_spill]] %s4401_s1  ;;  %s4554_s2 = sadd.s32 4294967295, %s4413_s24   ;;  %s4413_s24 = sphi %s4539_s24, %s5232_s24   ;;  %s4409_s23 = sphi %s4537_s23, %s5234_s23   ;;  %s4405_s22 = sphi %s4535_s22, %s5236_s22   ;;  %s4401_s1 = sphi %s4533_s1, %s5235_s1  }
   0xd   : > { %5206 = sst [smem:[#allocation12_spill]] %s4409_s23  ;;  %s3464_s25 = sadd.s32 4294967294, %s4413_s24  }
   0xe   : > { %5207 = sst [smem:[#allocation13_spill]] %s4413_s24  ;;  %s4558_s3 = sadd.s32 1, %s4413_s24  }
   0xf   : > { %5208 = sst [smem:[#allocation14_spill]] %s4558_s3  ;;  %s482_s26 = sadd.s32 1, %s4409_s23 }
  0x10   : > { %s479_s27 = ssub.s32 %s4413_s24, %s4558_s3  ;;  %p492_p0 = scmp.ne.s32.totalorder %s4409_s23, %s4405_s22 }
  0x11   : > { %p480_p1 = scmp.eq.s32.totalorder %s479_s27, 0  ;;  %p493_p2 = scmp.eq.s32.totalorder %s4554_s2, 1 }
  0x12   : > { %p498_p3 = scmp.ne.s32.totalorder %s4405_s22, %s4401_s1  ;;  %p499_p4 = scmp.eq.s32.totalorder %s3464_s25, 1 }
  0x13   : > { %s4569_s28 = scalar_select %p480_p1, %s4409_s23, %s482_s26  }
  0x14   : > { %p4571_p5 = por %p493_p2, %p492_p0  ;;  %p4575_p6 = por %p499_p4, %p498_p3 }
  0x15   : > { %5209 = sst [smem:[#allocation15_spill]] %s4569_s28  ;;  %p3465_p7 = scmp.ge.s32.totalorder %s4413_s24, 1 }
  0x16   : > { %s5211_s29 = scalar_select %p4575_p6, 1, 0 }
  0x17   : > { %p506_p8 = scmp.lt.s32.totalorder %s4413_s24, 3  ;;  %p5191_p9 = scmp.eq.s32.totalorder %s4554_s2, 0 }
  0x18   : > { %5212 = sst [smem:[#allocation16_spill]] %s5211_s29  ;;  %s4415_s0 = smov [#allocation2]  }
  0x19   : > { %p4582_p10 = pnand %p3465_p7, %p506_p8  ;;  %s524_s21 = sshll.u32 %s4415_s0, 4  ;;  %s525_s21 = int_to_ptr.vmem [resolvable:$true] %s524_s21 }
  0x1a   : > { %s4416_s26 = smov [#allocation5]   ;;  %s4304_s28 = scalar_lea.vmem %s525_s21, 6144 }
  0x1b   : > { %p4015_p11 = pneg %p4582_p10  ;;  %s558_s27 = sshll.u32 %s4416_s26, 4  ;;  %s559_s27 = int_to_ptr.vmem [resolvable:$true] %s558_s27 }
  0x1c   : > { %p4305_p0 = scmp.ne.s32.totalorder %s525_s21, %s4304_s28  ;;  %p4312_p3 = scmp.lt.s32.totalorder %s525_s21, %s525_s21 }
  0x1d   : > { %p4590_p12 = pnand %p5191_p9, %p4015_p11  ;;  %p4313_p4 = scmp.lt.s32.totalorder %s4304_s28, %s4304_s28 }
  0x1f   : > { %p4295_p13 = pneg %p4590_p12  ;;  %p4314_p7 = por %p4313_p4, %p4312_p3 }
  0x21   : > { %p4307_p1 = pnand %p4305_p0, %p4295_p13 }
  0x23   : > { %p4308_p2 = pneg %p4307_p1 }
  0x25   : > { %p4315_p8 = pnand %p4314_p7, %p4308_p2 }
  0x27   : > { %4318 = shalt.err (!%p4315_p8)
}
  0x28   : > { %s4417_s0 = smov 192   ;;  %s4418_s23 = smov 12  }
  0x29   : > { %4018 = dma.hbm_to_vmem [thread:$0]  (!%p4590_p12), %s5172_s6, 6144, %s525_s21, [#allocation3], %s4417_s0, %s4417_s0, %s4418_s23  }
  0x2a   : > { %s4330_s29 = scalar_lea.vmem %s559_s27, 4096  ;;  %p4338_p9 = scmp.lt.s32.totalorder %s559_s27, %s559_s27 }
  0x2b   : > { %p4331_p11 = scmp.ne.s32.totalorder %s559_s27, %s4330_s29  ;;  %p4339_p6 = scmp.lt.s32.totalorder %s4330_s29, %s4330_s29 }
  0x2d   : > { %p4333_p0 = pnand %p4331_p11, %p4295_p13  ;;  %p4340_p3 = por %p4339_p6, %p4338_p9 }
  0x2f   : > { %p4334_p1 = pneg %p4333_p0 }
  0x31   : > { %p4341_p2 = pnand %p4340_p3, %p4334_p1 }
  0x33   : > { %4344 = shalt.err (!%p4341_p2)
}
  0x34   : > { %s4419_s28 = smov 64   ;;  %s4420_s1 = smov 4  }
  0x35   : > { %4021 = dma.hbm_to_vmem [thread:$0]  (!%p4590_p12), %s5180_s14, 4096, %s559_s27, [#allocation6], %s4419_s28, %s4419_s28, %s4420_s1  }
  0x36   : > { %616 = sbr.rel (%p4582_p10) target bundleno = 5835 (0x16cb), region = 100  ;;  %p5215_p4 = scmp.eq.s32.totalorder (!%p4582_p10), %s4554_s2, 0 }
  0x3b   : > { %4388 = dma.done.wait (%p5215_p4), [#allocation3], 6144   ;;  %p5216_p13 = pmov %p5215_p4 }
  0x3c   : > { %p5217_p6 = pmov %p5215_p4 }
  0x3d   : > { %4390 = vsyncadd (%p5216_p13), [#allocation3], 4294961152 }
  0x3e   : > { %4392 = dma.done.wait (%p5217_p6), [#allocation6], 4096   ;;  %p5218_p9 = pmov %p5215_p4 }
  0x3f   : > { %p688_p7 = scmp.lt.s32.totalorder %s4554_s2, 1  ;;  %s5219_s3 = sld [smem:[#allocation17_spill]]  ;;  %v4075_v1 = vld [vmem:[#allocation2 + $0xac] ss:$12 sps:$4 sm:$0xff]   ;;  %v4077_v2 = vld [vmem:[#allocation2 + $0xa8] ss:$12 sps:$4 sm:$0xff]   ;;  %v769_v41 = vlaneseq }
  0x40   : > { %4394 = vsyncadd (%p5218_p9), [#allocation6], 4294963200  ;;  %v4421_v3 = vmov 0.0   ;;  %v4078_v4 = vld [vmem:[#allocation2 + $0xb0] ss:$12 sps:$4 sm:$0xff]   ;;  %912 = vmatprep.subr.bf16.mxu0 %v4075_v1  ;;  %v4422_v22 = vmov 0  }
  0x41   : > { %s4624_s20 = scalar_select %p688_p7, %s4554_s2, 1  ;;  %3809 = vmatprep.subr.bf16.mxu1 %v4421_v3  ;;  %v4079_v5 = vld [vmem:[#allocation2 + $0x94] ss:$12 sps:$4 sm:$0xff]   ;;  %v4081_v6 = vld [vmem:[#allocation2 + $0x90] ss:$12 sps:$4 sm:$0xff]   ;;  %913 = vmatpush1.bf16.msra.mxu0 %v4077_v2  ;;  %vm4423_vm0 = vmmov 0  }
  0x42   : > { %v4082_v7 = vld [vmem:[#allocation2 + $0x98] ss:$12 sps:$4 sm:$0xff]   ;;  %3810 = vmatpush3.bf16.msra.mxu1 %v4078_v4  ;;  %914 = vmatprep.subr.bf16.mxu0 %v4079_v5  ;;  %v4083_v12 = vld [vmem:[#allocation2 + $0x7c] ss:$12 sps:$4 sm:$0xff]   ;;  %v4086_v14 = vld [vmem:[#allocation2 + $0x80] ss:$12 sps:$4 sm:$0xff]  }
  0x43   : > { %s4627_s1 = sshll.u32 %s4624_s20, 3  ;;  %3811 = vmatprep.subr.bf16.mxu1 %v4421_v3  ;;  %v4085_v13 = vld [vmem:[#allocation2 + $0x78] ss:$12 sps:$4 sm:$0xff]   ;;  %v4089_v16 = vld [vmem:[#allocation2 + $0x60] ss:$12 sps:$4 sm:$0xff]   ;;  %944 = vmatprep.mubr.bf16.mxu0 %v4422_v22  ;;  %s5220_s25 = sld [smem:[#allocation21_spill]] }
  0x44   : > { %v4087_v15 = vld [vmem:[#allocation2 + $0x64] ss:$12 sps:$4 sm:$0xff]   ;;  %v4090_v17 = vld [vmem:[#allocation2 + $0x68] ss:$12 sps:$4 sm:$0xff]   ;;  %v4091_v18 = vld [vmem:[#allocation2 + $0x4c] ss:$12 sps:$4 sm:$0xff]   ;;  %3825 = vmatprep.mubr.msk.bf16.mxu1 %vm4423_vm0, %v4421_v3 }
  0x45   : > { %s691_s29 = scalar_lea.vmem %s5219_s3, %s4627_s1  ;;  %915 = vmatpush1.bf16.msra.mxu0 %v4081_v6  ;;  %v4093_v19 = vld [vmem:[#allocation2 + $0x48] ss:$12 sps:$4 sm:$0xff]   ;;  %v4094_v20 = vld [vmem:[#allocation2 + $0x50] ss:$12 sps:$4 sm:$0xff]   ;;  %v4098_v24 = vld [vmem:[#allocation2 + $0x38] ss:$12 sps:$4 sm:$0xff]  }
  0x46   : > { %v704_v0 = vld [vmem:[%s691_s29] sm:$0xff]  ;;  %3812 = vmatpush3.bf16.msra.mxu1 %v4082_v7  ;;  %916 = vmatprep.subr.bf16.mxu0 %v4083_v12  ;;  %v4097_v23 = vld [vmem:[#allocation2 + $0x30] ss:$12 sps:$4 sm:$0xff]   ;;  %v4106_v30 = vld [vmem:[#allocation2 + $0x8] ss:$12 sps:$4 sm:$0xff]   ;;  %v4660_v42 = vshrl.u32 %v769_v41, 7 }
  0x47   : > { %707 = vadd.xlane.f32.xlu0 %v704_v0  ;;  %3813 = vmatprep.subr.bf16.mxu1 %v4421_v3  ;;  %v4095_v21 = vld [vmem:[#allocation2 + $0x34] ss:$12 sps:$4 sm:$0xff]   ;;  %v4099_v25 = vld [vmem:[#allocation2 + $0x1c] ss:$12 sps:$4 sm:$0xff]   ;;  %v4101_v26 = vld [vmem:[#allocation2 + $0x18] ss:$12 sps:$4 sm:$0xff]  }
  0x48   : > { %v4102_v27 = vld [vmem:[#allocation2 + $0x20] ss:$12 sps:$4 sm:$0xff]   ;;  %v4103_v28 = vld [vmem:[#allocation2 + $0x4] ss:$12 sps:$4 sm:$0xff]   ;;  %v779_v43 = vsub.s32 2, %v4660_v42  ;;  %v4667_v45 = vsub.s32 1, %v4660_v42 }
  0x49   : > { %917 = vmatpush1.bf16.msra.mxu0 %v4085_v13  ;;  %v4105_v29 = vld [vmem:[#allocation2] ss:$12 sps:$4 sm:$0xff]   ;;  %v4670_v46 = vsub.s32 0, %v4660_v42  ;;  %vm1065_vm1 = vcmask 1043456   ;;  %vm1002_vm2 = vcmask 261120   ;;  %s5198_s23 = smov 64  }
  0x4a   : > { %3814 = vmatpush3.bf16.msra.mxu1 %v4086_v14  ;;  %918 = vmatprep.subr.bf16.mxu0 %v4087_v15  ;;  %v3476_v35 = vld [vmem:[%s5220_s25] ss:$0 sm:$0xff]  ;;  %s5197_s24 = smov 96   ;;  %s5195_s3 = smov 32   ;;  %vm1049_vm3 = vcmask 64512   ;;  %vm1455_vm4 = vcmask 523264  }
  0x4b   : > { %3815 = vmatprep.subr.bf16.mxu1 %v4421_v3  ;;  %v3477_v37 = vld [vmem:[%s5171_s5] ss:$0 sm:$0xff]  ;;  %s5221_s21 = sld [smem:[#allocation18_spill]]  ;;  %vm1457_vm5 = vcmask 785408   ;;  %s5222_s30 = smov 32  }
  0x4c   : > { %v767_v44 = vld [vmem:[%s5173_s7] sm:$0x7]  ;;  %s5227_s27 = sld [smem:[#allocation22_spill]] }
  0x4d   : > { %919 = vmatpush1.bf16.msra.mxu0 %v4089_v16  ;;  %v780_v47 = vrot.slane %v767_v44, %v779_v43  ;;  %v776_v48 = vrot.slane %v767_v44, %v4667_v45  ;;  %v772_v51 = vrot.slane %v767_v44, %v4670_v46 }
  0x4e   : > { %3816 = vmatpush3.bf16.msra.mxu1 %v4090_v17  ;;  %920 = vmatprep.subr.bf16.mxu0 %v4091_v18 }
  0x4f   : > { %3817 = vmatprep.subr.bf16.mxu1 %v4421_v3 }
  0x51   : > { %921 = vmatpush1.bf16.msra.mxu0 %v4093_v19  ;;  %s694_s25 = scalar_lea.vmem %s5221_s21, %s4624_s20  ;;  %s5226_s20 = smov 96  }
  0x52   : > { %3818 = vmatpush3.bf16.msra.mxu1 %v4094_v20  ;;  %922 = vmatprep.subr.bf16.mxu0 %v4095_v21  ;;  %v4711_v12 = vld [vmem:[%s694_s25] ss:$0 sm:$0xff]  ;;  %s5225_s25 = smov 64  }
  0x53   : > { %3819 = vmatprep.subr.bf16.mxu1 %v4421_v3 }
  0x55   : > { %923 = vmatpush1.bf16.msra.mxu0 %v4097_v23 }
  0x56   : > { %3820 = vmatpush3.bf16.msra.mxu1 %v4098_v24  ;;  %924 = vmatprep.subr.bf16.mxu0 %v4099_v25 }
  0x57   : > { %3821 = vmatprep.subr.bf16.mxu1 %v4421_v3 }
  0x59   : > { %925 = vmatpush1.bf16.msra.mxu0 %v4101_v26 }
  0x5a   : > { %3822 = vmatpush3.bf16.msra.mxu1 %v4102_v27  ;;  %926 = vmatprep.subr.bf16.mxu0 %v4103_v28 }
  0x5b   : > { %3823 = vmatprep.subr.bf16.mxu1 %v4421_v3 }
  0x5d   : > { %927 = vmatpush1.bf16.msra.mxu0 %v4105_v29 }
  0x5e   : > { %3824 = vmatpush3.bf16.msra.mxu1 %v4106_v30  ;;  %3829 = vmatprep.subr.bf16.mxu0 %v4421_v3 }
  0x5f   : > { %3835 = vmatprep.subr.bf16.mxu1 %v4421_v3 }
  0xd0   : > { %v708_v8 = vpop.xlane.xlu0 %707 }
  0xd1   : > { %v710_v9 = vmul.f32 0.0078125, %v708_v8 }
  0xd3   : > { %v711_v10 = vsub.f32 %v704_v0, %v710_v9 }
  0xd5   : > { %v712_v11 = vmul.f32 %v711_v10, %v711_v10 }
  0xd7   : > { %713 = vadd.xlane.f32.xlu0 %v712_v11 }
 0x160   : > { %v714_v31 = vpop.xlane.xlu0 %713 }
 0x161   : > { %v715_v32 = vmul.f32 0.0078125, %v714_v31 }
 0x163   : > { %v716_v33 = vadd.f32 1e-12, %v715_v32 }
 0x165   : > { %4243 = vrsqrt.f32 %v716_v33 }
 0x172   : > { %v4244_v34 = vpop.eup %4243 }
 0x173   : > { %v718_v36 = vmul.f32 %v4244_v34, %v711_v10 }
 0x175   : > { %v725_v38 = vmul.f32 %v3476_v35, %v718_v36 }
 0x177   : > { %v4652_v39 = vadd.f32 %v3477_v37, %v725_v38 }
 0x179   : > { %v766_v40 = vpack.c.bf16 %v4652_v39, %v4652_v39 }
 0x17b   : > { %945 = vmatmul.mubr.bf16.vlgmr.msra.gmra.mxu0 %v766_v40  ;;  %3826 = vmatmul.mubr.bf16.vlgmr.msra.gmra.mxu1 %v766_v40 }
 0x17c   : > { %3831 = vmatprep.mubr.msk.bf16.mxu0 %vm4423_vm0, %v4421_v3  ;;  %3837 = vmatprep.mubr.msk.bf16.mxu1 %vm4423_vm0, %v4421_v3 }
 0x23b   : > { %v946_v49 = vpop.f32.mrf.mxu0  ;;  %v987_v50 = vpop.f32.mrf.mxu1 }
 0x23c   : > { %v988_v52 = vadd.f32 %v987_v50, %v780_v47  ;;  %v947_v59 = vadd.f32 %v946_v49, %v772_v51 }
 0x23d   : > { %v948_v53 = vpop.f32.mrf.mxu0  ;;  %v3827_v54 = vpop.f32.mrf.mxu1 }
 0x23e   : > { %v4676_v55 = vpack.c.bf16 %v988_v52, %v988_v52  ;;  %v949_v56 = vadd.f32 %v948_v53, %v776_v48  ;;  %v993_v1 = vpack.c.bf16 %v947_v59, %v947_v59 }
 0x23f   : > { %v950_v57 = vpop.f32.mrf.mxu0  ;;  %v990_v58 = vpop.f32.mrf.mxu1 }
 0x240   : > { %v994_v60 = vpack.c.bf16 %v949_v56, %v949_v56  ;;  %v1067_v61 = vsel %vm1065_vm1, %v4676_v55, 0 }
 0x241   : > { %v951_v62 = vpop.f32.mrf.mxu0  ;;  %v3828_v63 = vpop.f32.mrf.mxu1  ;;  %3836 = vmatpush3.bf16.msra.mxu1 %v1067_v61 }
 0x242   : > { %1224 = vrot.lane.b32.xlu0 %v994_v60, %s5198_s23  ;;  %1113 = vrot.lane.b32.xlu1 %v994_v60, %s5197_s24  ;;  %v1007_v0 = vsel %vm1002_vm2, %v994_v60, 0 }
 0x243   : > { %3830 = vmatpush3.bf16.xpose.msra.mxu0 %v1007_v0  ;;  %3847 = vmatprep.subr.bf16.mxu1 %v4421_v3 }
 0x244   : > { %3841 = vmatprep.subr.bf16.mxu0 %v4421_v3 }
 0x246   : > { %1110 = vrot.lane.b32.xlu1 %v993_v1, %s5197_s24 }
 0x24a   : > { %1222 = vrot.lane.b32.xlu1 %v993_v1, %s5198_s23  ;;  %3832 = vmatmul.mubr.msk.bf16.vlgmr.msra.gmra.mxu0 %vm1002_vm2, %v993_v1 }
 0x24b   : > { %3843 = vmatprep.mubr.msk.bf16.mxu0 %vm4423_vm0, %v4421_v3 }
 0x24e   : > { %1334 = vrot.lane.b32.xlu1 %v994_v60, %s5195_s3 }
 0x252   : > { %1332 = vrot.lane.b32.xlu1 %v993_v1, %s5195_s3 }
 0x2b4   : > { %v1114_v2 = vpop.permute.xlu1 %1113  ;;  %v1225_v6 = vpop.permute.xlu0 %1224 }
 0x2b5   : > { %v1119_v4 = vsel %vm1002_vm2, %v1114_v2, 0  ;;  %v1230_v8 = vsel %vm1002_vm2, %v1225_v6, 0 }
 0x2b6   : > { %3842 = vmatpush3.bf16.xpose.msra.mxu0 %v1119_v4 }
 0x2b7   : > { %3853 = vmatprep.subr.bf16.mxu0 %v4421_v3 }
 0x2b8   : > { %v1111_v5 = vpop.permute.xlu1 %1110 }
 0x2bc   : > { %v1223_v7 = vpop.permute.xlu1 %1222 }
 0x2bd   : > { %3844 = vmatmul.mubr.msk.bf16.vlgmr.msra.gmra.mxu0 %vm1002_vm2, %v1111_v5 }
 0x2be   : > { %3854 = vmatpush3.bf16.xpose.msra.mxu0 %v1230_v8  ;;  %3855 = vmatprep.mubr.msk.bf16.mxu0 %vm4423_vm0, %v4421_v3 }
 0x2bf   : > { %3865 = vmatprep.subr.bf16.mxu0 %v4421_v3 }
 0x2c0   : > { %v1335_v9 = vpop.permute.xlu1 %1334 }
 0x2c1   : > { %v1340_v10 = vsel %vm1002_vm2, %v1335_v9, 0 }
 0x2c4   : > { %v1333_v11 = vpop.permute.xlu1 %1332 }
 0x2c5   : > { %3856 = vmatmul.mubr.msk.bf16.vlgmr.msra.gmra.mxu0 %vm1002_vm2, %v1223_v7 }
 0x2c6   : > { %3866 = vmatpush3.bf16.xpose.msra.mxu0 %v1340_v10  ;;  %3867 = vmatprep.mubr.msk.bf16.mxu0 %vm4423_vm0, %v4421_v3 }
 0x2c7   : > { %3877 = vmatprep.subr.bf16.mxu0 %v4421_v3 }
 0x2cd   : > { %3868 = vmatmul.mubr.msk.bf16.vlgmr.msra.gmra.mxu0 %vm1002_vm2, %v1333_v11 }
 0x2ce   : > { %3893 = vmatprep.mubr.msk.bf16.mxu0 %vm4423_vm0, %v4421_v3 }
 0x30a   : > { %v1043_v13 = vpop.f32.mrf.mxu0 }
 0x30b   : > { %v1044_v14 = vadd.f32 %v4711_v12, %v1043_v13 }
 0x30c   : > { %v3833_v15 = vpop.f32.mrf.mxu0 }
 0x30d   : > { %v1050_v16 = vsel %vm1049_vm3, %v1044_v14, -inf }
 0x30e   : > { %1051 = vmax.xlane.f32.xlu1 %v1050_v16  ;;  %v1046_v17 = vpop.f32.mrf.mxu0 }
 0x310   : > { %v3834_v18 = vpop.f32.mrf.mxu0 }
 0x37d   : > { %v1155_v19 = vpop.f32.mrf.mxu0 }
 0x37e   : > { %v1156_v20 = vadd.f32 %v4711_v12, %v1155_v19 }
 0x37f   : > { %v3845_v21 = vpop.f32.mrf.mxu0 }
 0x380   : > { %v1161_v23 = vsel %vm1049_vm3, %v1156_v20, -inf }
 0x381   : > { %1162 = vmax.xlane.f32.xlu0 %v1161_v23  ;;  %v1158_v24 = vpop.f32.mrf.mxu0 }
 0x383   : > { %v3846_v25 = vpop.f32.mrf.mxu0 }
 0x385   : > { %v1266_v26 = vpop.f32.mrf.mxu0 }
 0x386   : > { %v1267_v27 = vadd.f32 %v4711_v12, %v1266_v26 }
 0x387   : > { %v3857_v28 = vpop.f32.mrf.mxu0 }
 0x388   : > { %v1272_v29 = vsel %vm1049_vm3, %v1267_v27, -inf  ;;  %v4107_v28 = vld [vmem:[%s5174_s8 + $0x38] sm:$0xff]  }
 0x389   : > { %1273 = vmax.xlane.f32.xlu1 %v1272_v29  ;;  %v1269_v30 = vpop.f32.mrf.mxu0  ;;  %3878 = vmatpush3.bf16.msra.mxu0 %v4107_v28  ;;  %v4108_v29 = vld [vmem:[%s5174_s8 + $0x30] sm:$0xff]  }
 0x38a   : > { %3879 = vmatprep.subr.bf16.mxu0 %v4421_v3 }
 0x38b   : > { %v3858_v31 = vpop.f32.mrf.mxu0 }
 0x38d   : > { %v1376_v32 = vpop.f32.mrf.mxu0  ;;  %3880 = vmatpush3.bf16.msra.mxu0 %v4108_v29  ;;  %v3520_v29 = vld [vmem:[%s5176_s10] ss:$0 sm:$0xff] }
 0x38e   : > { %v1377_v33 = vadd.f32 %v4711_v12, %v1376_v32  ;;  %v4109_v32 = vld [vmem:[%s5174_s8 + $0x28] sm:$0xff]   ;;  %3881 = vmatprep.subr.bf16.mxu0 %v4421_v3 }
 0x38f   : > { %v3869_v34 = vpop.f32.mrf.mxu0 }
 0x390   : > { %v1382_v35 = vsel %vm1049_vm3, %v1377_v33, -inf }
 0x391   : > { %1383 = vmax.xlane.f32.xlu1 %v1382_v35  ;;  %v1379_v36 = vpop.f32.mrf.mxu0  ;;  %3882 = vmatpush3.bf16.msra.mxu0 %v4109_v32  ;;  %v4110_v35 = vld [vmem:[%s5174_s8 + $0x20] sm:$0xff]  }
 0x392   : > { %3883 = vmatprep.subr.bf16.mxu0 %v4421_v3 }
 0x393   : > { %v3870_v37 = vpop.f32.mrf.mxu0 }
 0x395   : > { %3884 = vmatpush3.bf16.msra.mxu0 %v4110_v35  ;;  %v4139_v35 = vld [vmem:[#allocation5 + $0x78] sm:$0xff]  }
 0x396   : > { %3885 = vmatprep.subr.bf16.mxu0 %v4421_v3 }
 0x397   : > { %v1052_v38 = vpop.xlane.xlu1 %1051 }
 0x398   : > { %v1053_v40 = vsub.f32 %v1044_v14, %v1052_v38  ;;  %v4111_v38 = vld [vmem:[%s5174_s8 + $0x18] sm:$0xff]  }
 0x399   : > { %3886 = vmatpush3.bf16.msra.mxu0 %v4111_v38  ;;  %v4142_v38 = vld [vmem:[#allocation5 + $0x30] sm:$0xff]  }
 0x39a   : > { %v1054_v41 = vmul.f32 1.442695, %v1053_v40  ;;  %3887 = vmatprep.subr.bf16.mxu0 %v4421_v3 }
 0x39c   : > { %4245 = vpow2.f32 %v1054_v41 }
 0x3a9   : > { %v4246_v44 = vpop.eup %4245 }
 0x3aa   : > { %v1056_v47 = vsel %vm1049_vm3, %v4246_v44, 0.0 }
 0x3ab   : > { %1057 = vadd.xlane.f32.xlu0 %v1056_v47  ;;  %v4113_v47 = vld [vmem:[%s5174_s8 + $0x8] sm:$0xff]  }
 0x40a   : > { %v1163_v48 = vpop.xlane.xlu0 %1162 }
 0x40b   : > { %v1164_v49 = vsub.f32 %v1156_v20, %v1163_v48  ;;  %v4114_v48 = vld [vmem:[%s5174_s8] sm:$0xff]  }
 0x40d   : > { %v1165_v50 = vmul.f32 1.442695, %v1164_v49 }
 0x40f   : > { %4247 = vpow2.f32 %v1165_v50 }
 0x412   : > { %v1274_v51 = vpop.xlane.xlu1 %1273 }
 0x413   : > { %v1275_v52 = vsub.f32 %v1267_v27, %v1274_v51 }
 0x415   : > { %v1276_v53 = vmul.f32 1.442695, %v1275_v52 }
 0x417   : > { %4249 = vpow2.f32 %v1276_v53 }
 0x41a   : > { %v1384_v60 = vpop.xlane.xlu1 %1383 }
 0x41b   : > { %v1385_v61 = vsub.f32 %v1377_v33, %v1384_v60 }
 0x41c   : > { %v4248_v54 = vpop.eup %4247 }
 0x41d   : > { %v1167_v56 = vsel %vm1049_vm3, %v4248_v54, 0.0  ;;  %v1386_v62 = vmul.f32 1.442695, %v1385_v61  ;;  %v3511_v61 = vld [vmem:[%s5175_s9] ss:$0 sm:$0xff] }
 0x41e   : > { %1168 = vadd.xlane.f32.xlu1 %v1167_v56 }
 0x424   : > { %v4250_v57 = vpop.eup %4249 }
 0x425   : > { %v1278_v58 = vsel %vm1049_vm3, %v4250_v57, 0.0 }
 0x426   : > { %1279 = vadd.xlane.f32.xlu0 %v1278_v58 }
 0x42f   : > { %1284 = vrot.lane.b32.xlu1 %v4676_v55, %s5198_s23 }
 0x434   : > { %v1058_v59 = vpop.xlane.xlu0 %1057 }
 0x435   : > { %4251 = vrcp.f32 %v1058_v59 }
 0x436   : > { %4253 = vpow2.f32 %v1386_v62 }
 0x43c   : > { %1174 = vrot.lane.b32.xlu0 %v4676_v55, %s5197_s24 }
 0x442   : > { %v4252_v63 = vpop.eup %4251 }
 0x443   : > { %v1060_v0 = vmul.f32 %v4252_v63, %v4246_v44  ;;  %v4254_v2 = vpop.eup %4253  ;;  %v4112_v44 = vld [vmem:[%s5174_s8 + $0x10] sm:$0xff]  }
 0x444   : > { %v1388_v4 = vsel %vm1049_vm3, %v4254_v2, 0.0  ;;  %3888 = vmatpush3.bf16.msra.mxu0 %v4112_v44  ;;  %v4145_v44 = vld [vmem:[#allocation5 + $0x60] sm:$0xff]  }
 0x445   : > { %v1061_v1 = vpack.c.bf16 %v1060_v0, %v1060_v0  ;;  %3889 = vmatprep.subr.bf16.mxu0 %v4421_v3 }
 0x447   : > { %3838 = vmatmul.mubr.msk.bf16.vlgmr.msra.gmra.mxu1 %vm1049_vm3, %v1061_v1 }
 0x448   : > { %3849 = vmatprep.mubr.msk.bf16.mxu1 %vm4423_vm0, %v4421_v3  ;;  %3890 = vmatpush3.bf16.msra.mxu0 %v4113_v47  ;;  %v4146_v47 = vld [vmem:[#allocation5 + $0x20] sm:$0xff]  }
 0x449   : > { %3891 = vmatprep.subr.bf16.mxu0 %v4421_v3 }
 0x44c   : > { %3892 = vmatpush3.bf16.msra.mxu0 %v4114_v48  ;;  %v4147_v48 = vld [vmem:[#allocation5 + $0x58] sm:$0xff]  }
 0x44d   : > { %3722 = vmatprep.subr.bf16.mxu0 %v4139_v35  ;;  %v4161_v35 = vld [vmem:[#allocation2 + $0x154] ss:$12 sps:$4 sm:$0xff]  }
 0x453   : > { %1389 = vadd.xlane.f32.xlu1 %v1388_v4 }
 0x464   : > { %1394 = vrot.lane.b32.xlu1 %v4676_v55, %s5195_s3 }
 0x4a7   : > { %v1169_v5 = vpop.xlane.xlu1 %1168 }
 0x4a8   : > { %4255 = vrcp.f32 %v1169_v5  ;;  %v4115_v5 = vld [vmem:[%s5178_s12 + $0x70] ss:$8 sps:$4 sm:$0xff]  }
 0x4ab   : > { %v1285_v11 = vpop.permute.xlu1 %1284 }
 0x4ac   : > { %v1290_v14 = vsel %vm1065_vm1, %v1285_v11, 0 }
 0x4af   : > { %v1280_v6 = vpop.xlane.xlu0 %1279 }
 0x4b0   : > { %4257 = vrcp.f32 %v1280_v6  ;;  %v4117_v6 = vld [vmem:[%s5178_s12 + $0x74] ss:$8 sps:$4 sm:$0xff]  }
 0x4b3   : > { %v1175_v7 = vpop.permute.xlu0 %1174 }
 0x4b4   : > { %v1180_v8 = vsel %vm1065_vm1, %v1175_v7, 0  ;;  %v4120_v7 = vld [vmem:[%s5178_s12 + $0x64] ss:$8 sps:$4 sm:$0xff]  }
 0x4b5   : > { %v4256_v9 = vpop.eup %4255  ;;  %3848 = vmatpush3.bf16.msra.mxu1 %v1180_v8 }
 0x4b6   : > { %3859 = vmatprep.subr.bf16.mxu1 %v4421_v3  ;;  %v1171_v10 = vmul.f32 %v4256_v9, %v4248_v54 }
 0x4b8   : > { %v1172_v13 = vpack.c.bf16 %v1171_v10, %v1171_v10 }
 0x4ba   : > { %3850 = vmatmul.mubr.msk.bf16.vlgmr.msra.gmra.mxu1 %vm1049_vm3, %v1172_v13  ;;  %v4123_v13 = vld [vmem:[%s5178_s12 + $0x54] ss:$8 sps:$4 sm:$0xff]  }
 0x4bb   : > { %3860 = vmatpush3.bf16.msra.mxu1 %v1290_v14  ;;  %3861 = vmatprep.mubr.msk.bf16.mxu1 %vm4423_vm0, %v4421_v3  ;;  %v4121_v14 = vld [vmem:[%s5178_s12 + $0x50] ss:$8 sps:$4 sm:$0xff]  }
 0x4bc   : > { %3871 = vmatprep.subr.bf16.mxu1 %v4421_v3 }
 0x4bd   : > { %v4258_v55 = vpop.eup %4257 }
 0x4be   : > { %v1282_v15 = vmul.f32 %v4258_v55, %v4250_v57  ;;  %v4124_v55 = vld [vmem:[%s5178_s12 + $0x40] ss:$8 sps:$4 sm:$0xff]  }
 0x4c0   : > { %v1283_v16 = vpack.c.bf16 %v1282_v15, %v1282_v15  ;;  %v4126_v15 = vld [vmem:[%s5178_s12 + $0x44] ss:$8 sps:$4 sm:$0xff]  }
 0x4c2   : > { %3862 = vmatmul.mubr.msk.bf16.vlgmr.msra.gmra.mxu1 %vm1049_vm3, %v1283_v16  ;;  %v4129_v16 = vld [vmem:[%s5178_s12 + $0x34] ss:$8 sps:$4 sm:$0xff]  }
 0x4c3   : > { %3873 = vmatprep.mubr.msk.bf16.mxu1 %vm4423_vm0, %v4421_v3 }
 0x4dc   : > { %v1390_v17 = vpop.xlane.xlu1 %1389 }
 0x4dd   : > { %4259 = vrcp.f32 %v1390_v17  ;;  %v4127_v17 = vld [vmem:[%s5178_s12 + $0x30] ss:$8 sps:$4 sm:$0xff]  }
 0x4e0   : > { %v1395_v18 = vpop.permute.xlu1 %1394 }
 0x4e1   : > { %v1400_v19 = vsel %vm1065_vm1, %v1395_v18, 0  ;;  %v4132_v18 = vld [vmem:[%s5178_s12 + $0x24] ss:$8 sps:$4 sm:$0xff]  }
 0x4e2   : > { %3872 = vmatpush3.bf16.msra.mxu1 %v1400_v19  ;;  %v4130_v19 = vld [vmem:[%s5178_s12 + $0x20] ss:$8 sps:$4 sm:$0xff]  }
 0x4e3   : > { %1708 = vmatprep.subr.bf16.mxu1 %v4117_v6 }
 0x4ea   : > { %v4260_v20 = vpop.eup %4259 }
 0x4eb   : > { %v1392_v21 = vmul.f32 %v4260_v20, %v4254_v2  ;;  %v4135_v20 = vld [vmem:[%s5178_s12 + $0x14] ss:$8 sps:$4 sm:$0xff]  }
 0x4ed   : > { %v1393_v23 = vpack.c.bf16 %v1392_v21, %v1392_v21  ;;  %v4133_v21 = vld [vmem:[%s5178_s12 + $0x10] ss:$8 sps:$4 sm:$0xff]  }
 0x4ef   : > { %3874 = vmatmul.mubr.msk.bf16.vlgmr.msra.gmra.mxu1 %vm1049_vm3, %v1393_v23  ;;  %v4138_v23 = vld [vmem:[%s5178_s12 + $0x4] ss:$8 sps:$4 sm:$0xff]  }
 0x4f0   : > { %1740 = vmatprep.mubr.bf16.mxu1 %v4422_v22  ;;  %1709 = vmatpush1.bf16.msra.mxu1 %v4115_v5 }
 0x4f1   : > { %1710 = vmatprep.subr.bf16.mxu1 %v4120_v7 }
 0x507   : > { %v1103_v24 = vpop.f32.mrf.mxu1 }
 0x509   : > { %v3839_v25 = vpop.f32.mrf.mxu1 }
 0x50b   : > { %v1106_v26 = vpop.f32.mrf.mxu1 }
 0x50d   : > { %v3840_v27 = vpop.f32.mrf.mxu1 }
 0x57a   : > { %v1216_v30 = vpop.f32.mrf.mxu1 }
 0x57b   : > { %1443 = vrot.lane.b32.xlu0 %v1216_v30, %s5195_s3 }
 0x57c   : > { %v3851_v31 = vpop.f32.mrf.mxu1 }
 0x57d   : > { %v3521_v31 = vld [vmem:[%s5177_s11] ss:$0 sm:$0xff] }
 0x57e   : > { %v1219_v33 = vpop.f32.mrf.mxu1 }
 0x580   : > { %v3852_v34 = vpop.f32.mrf.mxu1 }
 0x582   : > { %v1326_v36 = vpop.f32.mrf.mxu1 }
 0x583   : > { %1447 = vrot.lane.b32.xlu1 %v1326_v36, %s5198_s23  ;;  %v4140_v36 = vld [vmem:[#allocation5 + $0x38] sm:$0xff]  }
 0x584   : > { %v3863_v37 = vpop.f32.mrf.mxu1 }
 0x585   : > { %v4141_v37 = vld [vmem:[#allocation5 + $0x70] sm:$0xff]  }
 0x586   : > { %v1329_v40 = vpop.f32.mrf.mxu1 }
 0x587   : > { %v4143_v40 = vld [vmem:[#allocation5 + $0x68] sm:$0xff]  }
 0x588   : > { %v3864_v41 = vpop.f32.mrf.mxu1 }
 0x589   : > { %v4144_v41 = vld [vmem:[#allocation5 + $0x28] sm:$0xff]  }
 0x5af   : > { %v1436_v49 = vpop.f32.mrf.mxu1 }
 0x5b0   : > { %1451 = vrot.lane.b32.xlu0 %v1436_v49, %s5197_s24  ;;  %v4148_v49 = vld [vmem:[#allocation5 + $0x18] sm:$0xff]  }
 0x5b1   : > { %v3875_v50 = vpop.f32.mrf.mxu1 }
 0x5b2   : > { %v4149_v50 = vld [vmem:[#allocation5 + $0x50] sm:$0xff]  }
 0x5b3   : > { %v1439_v51 = vpop.f32.mrf.mxu1 }
 0x5b4   : > { %v4150_v51 = vld [vmem:[#allocation5 + $0x10] sm:$0xff]  }
 0x5b5   : > { %v3876_v52 = vpop.f32.mrf.mxu1 }
 0x5b6   : > { %v4151_v52 = vld [vmem:[#allocation5 + $0x48] sm:$0xff]  }
 0x5ed   : > { %v1444_v53 = vpop.permute.xlu0 %1443 }
 0x5ee   : > { %v1454_v56 = vsel %vm1002_vm2, %v1103_v24, %v1444_v53  ;;  %v4136_v24 = vld [vmem:[%s5178_s12] ss:$8 sps:$4 sm:$0xff]  }
 0x5ef   : > { %v4152_v53 = vld [vmem:[#allocation5 + $0x8] sm:$0xff]  }
 0x5f5   : > { %v1448_v54 = vpop.permute.xlu1 %1447 }
 0x5f6   : > { %v1456_v57 = vsel %vm1455_vm4, %v1454_v56, %v1448_v54  ;;  %v4153_v54 = vld [vmem:[#allocation5 + $0x40] sm:$0xff]  }
 0x5f7   : > { %v4154_v56 = vld [vmem:[#allocation5] sm:$0xff]  }
 0x622   : > { %v1452_v58 = vpop.permute.xlu0 %1451 }
 0x623   : > { %v1458_v59 = vsel %vm1457_vm5, %v1456_v57, %v1452_v58  ;;  %v1616_v57 = vld [vmem:[%s5179_s13] sm:$0x3] }
 0x624   : > { %v1475_v60 = vpack.c.bf16 %v1458_v59, %v1458_v59  ;;  %v1621_v58 = vrot.slane %v1616_v57, %v4670_v46  ;;  %v1625_v59 = vrot.slane %v1616_v57, %v4667_v45  ;;  %v4175_v57 = vld [vmem:[#allocation2 + $0xf0] ss:$12 sps:$4 sm:$0xff]  }
 0x626   : > { %3894 = vmatmul.mubr.bf16.vlgmr.msra.gmra.mxu0 %v1475_v60 }
 0x627   : > { %3723 = vmatpush3.bf16.msra.mxu0 %v4140_v36  ;;  %v4162_v36 = vld [vmem:[#allocation2 + $0x158] ss:$12 sps:$4 sm:$0xff]  }
 0x628   : > { %3724 = vmatprep.subr.bf16.mxu0 %v4141_v37  ;;  %v4159_v37 = vld [vmem:[#allocation2 + $0x150] ss:$12 sps:$4 sm:$0xff]  }
 0x62b   : > { %3725 = vmatpush3.bf16.msra.mxu0 %v4142_v38 }
 0x62c   : > { %3726 = vmatprep.subr.bf16.mxu0 %v4143_v40 }
 0x62f   : > { %3727 = vmatpush3.bf16.msra.mxu0 %v4144_v41 }
 0x630   : > { %3728 = vmatprep.subr.bf16.mxu0 %v4145_v44  ;;  %v4165_v44 = vld [vmem:[#allocation2 + $0x13c] ss:$12 sps:$4 sm:$0xff]  }
 0x633   : > { %3729 = vmatpush3.bf16.msra.mxu0 %v4146_v47  ;;  %v4163_v47 = vld [vmem:[#allocation2 + $0x138] ss:$12 sps:$4 sm:$0xff]  }
 0x634   : > { %3730 = vmatprep.subr.bf16.mxu0 %v4147_v48  ;;  %v4166_v48 = vld [vmem:[#allocation2 + $0x140] ss:$12 sps:$4 sm:$0xff]  }
 0x637   : > { %3731 = vmatpush3.bf16.msra.mxu0 %v4148_v49  ;;  %v4167_v49 = vld [vmem:[#allocation2 + $0x120] ss:$12 sps:$4 sm:$0xff]  }
 0x638   : > { %3732 = vmatprep.subr.bf16.mxu0 %v4149_v50  ;;  %v4169_v50 = vld [vmem:[#allocation2 + $0x124] ss:$12 sps:$4 sm:$0xff]  }
 0x63b   : > { %3733 = vmatpush3.bf16.msra.mxu0 %v4150_v51  ;;  %v4170_v51 = vld [vmem:[#allocation2 + $0x128] ss:$12 sps:$4 sm:$0xff]  }
 0x63c   : > { %3734 = vmatprep.subr.bf16.mxu0 %v4151_v52  ;;  %v4173_v52 = vld [vmem:[#allocation2 + $0x10c] ss:$12 sps:$4 sm:$0xff]  }
 0x63f   : > { %3735 = vmatpush3.bf16.msra.mxu0 %v4152_v53  ;;  %v4171_v53 = vld [vmem:[#allocation2 + $0x108] ss:$12 sps:$4 sm:$0xff]  }
 0x640   : > { %3736 = vmatprep.subr.bf16.mxu0 %v4153_v54  ;;  %v4174_v54 = vld [vmem:[#allocation2 + $0x110] ss:$12 sps:$4 sm:$0xff]  }
 0x643   : > { %3737 = vmatpush3.bf16.msra.mxu0 %v4154_v56  ;;  %v4177_v56 = vld [vmem:[#allocation2 + $0xf4] ss:$12 sps:$4 sm:$0xff]  }
 0x644   : > { %3897 = vmatprep.subr.bf16.mxu0 %v4421_v3 }
 0x6e6   : > { %v1565_v62 = vpop.f32.mrf.mxu0 }
 0x6e7   : > { %v1566_v63 = vadd.f32 %v3511_v61, %v1565_v62 }
 0x6e8   : > { %v3895_v0 = vpop.f32.mrf.mxu0 }
 0x6e9   : > { %v1571_v1 = vadd.f32 %v1566_v63, %v4652_v39  ;;  %v4118_v39 = vld [vmem:[%s5178_s12 + $0x60] ss:$8 sps:$4 sm:$0xff]  }
 0x6ea   : > { %v1568_v2 = vpop.f32.mrf.mxu0  ;;  %1711 = vmatpush1.bf16.msra.mxu1 %v4118_v39 }
 0x6eb   : > { %1574 = vadd.xlane.f32.xlu1 %v1571_v1  ;;  %1712 = vmatprep.subr.bf16.mxu1 %v4123_v13 }
 0x6ec   : > { %v3896_v4 = vpop.f32.mrf.mxu0 }
 0x6ee   : > { %1713 = vmatpush1.bf16.msra.mxu1 %v4121_v14 }
 0x6ef   : > { %1714 = vmatprep.subr.bf16.mxu1 %v4126_v15 }
 0x6f2   : > { %1715 = vmatpush1.bf16.msra.mxu1 %v4124_v55 }
 0x6f3   : > { %1716 = vmatprep.subr.bf16.mxu1 %v4129_v16 }
 0x6f6   : > { %1717 = vmatpush1.bf16.msra.mxu1 %v4127_v17 }
 0x6f7   : > { %1718 = vmatprep.subr.bf16.mxu1 %v4132_v18 }
 0x6fa   : > { %1719 = vmatpush1.bf16.msra.mxu1 %v4130_v19 }
 0x6fb   : > { %1720 = vmatprep.subr.bf16.mxu1 %v4135_v20 }
 0x6fe   : > { %1721 = vmatpush1.bf16.msra.mxu1 %v4133_v21 }
 0x6ff   : > { %1722 = vmatprep.subr.bf16.mxu1 %v4138_v23 }
 0x702   : > { %1723 = vmatpush1.bf16.msra.mxu1 %v4136_v24  ;;  %v3538_v24 = vld [vmem:[%s5181_s15] ss:$0 sm:$0xff] }
 0x774   : > { %v1575_v8 = vpop.xlane.xlu1 %1574 }
 0x775   : > { %v1576_v9 = vmul.f32 0.0078125, %v1575_v8 }
 0x777   : > { %v1577_v10 = vsub.f32 %v1571_v1, %v1576_v9 }
 0x779   : > { %v1578_v11 = vmul.f32 %v1577_v10, %v1577_v10 }
 0x77b   : > { %1579 = vadd.xlane.f32.xlu0 %v1578_v11 }
 0x804   : > { %v1580_v25 = vpop.xlane.xlu0 %1579 }
 0x805   : > { %v1581_v26 = vmul.f32 0.0078125, %v1580_v25 }
 0x807   : > { %v1582_v27 = vadd.f32 1e-12, %v1581_v26 }
 0x809   : > { %4261 = vrsqrt.f32 %v1582_v27 }
 0x816   : > { %v4262_v28 = vpop.eup %4261 }
 0x817   : > { %v1584_v30 = vmul.f32 %v4262_v28, %v1577_v10 }
 0x819   : > { %v1591_v32 = vmul.f32 %v3520_v29, %v1584_v30 }
 0x81b   : > { %v4842_v33 = vadd.f32 %v3521_v31, %v1591_v32  ;;  %v4155_v31 = vld [vmem:[#allocation2 + $0x168] ss:$12 sps:$4 sm:$0xff]   ;;  %v4157_v32 = vld [vmem:[#allocation2 + $0x16c] ss:$12 sps:$4 sm:$0xff]  }
 0x81c   : > { %2152 = vmatprep.subr.bf16.mxu1 %v4157_v32 }
 0x81d   : > { %v1615_v34 = vpack.c.bf16 %v4842_v33, %v4842_v33 }
 0x81f   : > { %1741 = vmatmul.mubr.bf16.vlgmr.msra.gmra.mxu1 %v1615_v34  ;;  %v4158_v34 = vld [vmem:[#allocation2 + $0x170] ss:$12 sps:$4 sm:$0xff]  }
 0x820   : > { %2184 = vmatprep.mubr.bf16.mxu1 %v4422_v22  ;;  %2153 = vmatpush1.bf16.msra.mxu1 %v4155_v31 }
 0x821   : > { %2154 = vmatprep.subr.bf16.mxu1 %v4161_v35 }
 0x824   : > { %2155 = vmatpush1.bf16.msra.mxu1 %v4159_v37 }
 0x825   : > { %2156 = vmatprep.subr.bf16.mxu1 %v4165_v44 }
 0x828   : > { %2157 = vmatpush1.bf16.msra.mxu1 %v4163_v47 }
 0x829   : > { %2158 = vmatprep.subr.bf16.mxu1 %v4169_v50 }
 0x82c   : > { %2159 = vmatpush1.bf16.msra.mxu1 %v4167_v49 }
 0x82d   : > { %2160 = vmatprep.subr.bf16.mxu1 %v4173_v52 }
 0x830   : > { %2161 = vmatpush1.bf16.msra.mxu1 %v4171_v53 }
 0x831   : > { %2162 = vmatprep.subr.bf16.mxu1 %v4177_v56 }
 0x834   : > { %2163 = vmatpush1.bf16.msra.mxu1 %v4175_v57 }
 0x8df   : > { %v1742_v60 = vpop.f32.mrf.mxu1 }
 0x8e0   : > { %v1743_v61 = vadd.f32 %v1742_v60, %v1621_v58  ;;  %v4178_v58 = vld [vmem:[#allocation2 + $0xf8] ss:$12 sps:$4 sm:$0xff]  }
 0x8e1   : > { %v1744_v62 = vpop.f32.mrf.mxu1  ;;  %v4179_v60 = vld [vmem:[#allocation2 + $0xd8] ss:$12 sps:$4 sm:$0xff]  }
 0x8e2   : > { %v1749_v63 = vmul.f32 %v1743_v61, %v1743_v61  ;;  %v1745_v0 = vadd.f32 %v1744_v62, %v1625_v59  ;;  %v4181_v59 = vld [vmem:[#allocation2 + $0xdc] ss:$12 sps:$4 sm:$0xff]   ;;  %v4185_v62 = vld [vmem:[#allocation2 + $0xc4] ss:$12 sps:$4 sm:$0xff]  }
 0x8e3   : > { %v1746_v1 = vpop.f32.mrf.mxu1  ;;  %2164 = vmatprep.subr.bf16.mxu1 %v4181_v59 }
 0x8e4   : > { %v1751_v2 = vmul.f32 %v1749_v63, %v1743_v61  ;;  %v1750_v4 = vmul.f32 %v1745_v0, %v1745_v0  ;;  %2165 = vmatpush1.bf16.msra.mxu1 %v4179_v60  ;;  %v4183_v63 = vld [vmem:[#allocation2 + $0xc0] ss:$12 sps:$4 sm:$0xff]  }
 0x8e5   : > { %v1747_v5 = vpop.f32.mrf.mxu1  ;;  %2166 = vmatprep.subr.bf16.mxu1 %v4185_v62 }
 0x8e6   : > { %v1753_v6 = vmul.f32 0.044715, %v1751_v2  ;;  %v1752_v7 = vmul.f32 %v1750_v4, %v1745_v0 }
 0x8e8   : > { %v1755_v39 = vadd.f32 %v1753_v6, %v1743_v61  ;;  %v1754_v8 = vmul.f32 0.044715, %v1752_v7  ;;  %2167 = vmatpush1.bf16.msra.mxu1 %v4183_v63  ;;  %v3555_v6 = vld [vmem:[%s5182_s16] ss:$0 sm:$0xff] }
 0x8e9   : > { %3917 = vmatprep.subr.bf16.mxu1 %v4421_v3 }
 0x8ea   : > { %v1757_v9 = vmul.f32 0.7978846, %v1755_v39  ;;  %v1756_v10 = vadd.f32 %v1754_v8, %v1745_v0  ;;  %v3556_v39 = vld [vmem:[%s5183_s17] ss:$0 sm:$0xff] }
 0x8ec   : > { %4263 = vtanh.f32 %v1757_v9  ;;  %v1758_v11 = vmul.f32 0.7978846, %v1756_v10 }
 0x8ee   : > { %4265 = vtanh.f32 %v1758_v11  ;;  %v3557_v11 = vld [vmem:[%s5173_s7 + $0x3] sm:$0x7] }
 0x8f9   : > { %v4264_v13 = vpop.eup %4263 }
 0x8fa   : > { %v1761_v14 = vadd.f32 1.0, %v4264_v13  ;;  %v2016_v13 = vrot.slane %v3557_v11, %v4667_v45 }
 0x8fb   : > { %v4266_v55 = vpop.eup %4265 }
 0x8fc   : > { %v1762_v15 = vadd.f32 1.0, %v4266_v55  ;;  %v1763_v16 = vmul.f32 0.5, %v1761_v14 }
 0x8fe   : > { %v1764_v17 = vmul.f32 0.5, %v1762_v15  ;;  %v1765_v18 = vmul.f32 %v1763_v16, %v1743_v61  ;;  %v4182_v61 = vld [vmem:[#allocation2 + $0xe0] ss:$12 sps:$4 sm:$0xff]  }
 0x900   : > { %v1766_v19 = vmul.f32 %v1764_v17, %v1745_v0  ;;  %v1799_v21 = vpack.c.bf16 %v1765_v18, %v1765_v18  ;;  %v4186_v0 = vld [vmem:[#allocation2 + $0xc8] ss:$12 sps:$4 sm:$0xff]   ;;  %v2020_v17 = vrot.slane %v3557_v11, %v779_v43 }
 0x902   : > { %v1800_v20 = vpack.c.bf16 %v1766_v19, %v1766_v19 }
 0x904   : > { %1936 = vmatprep.mubr.bf16.mxu0 %v1800_v20 }
 0x905   : > { %1937 = vmatmul.mubr.bf16.vlgmr.msra.gmra.mxu0 %v1799_v21  ;;  %v2012_v21 = vrot.slane %v3557_v11, %v4670_v46 }
 0x906   : > { %3913 = vmatprep.mubr.msk.bf16.mxu0 %vm4423_vm0, %v4421_v3  ;;  %3898 = vmatpush3.bf16.msra.mxu0 %v4158_v34 }
 0x907   : > { %3899 = vmatprep.subr.bf16.mxu0 %v4421_v3 }
 0x90a   : > { %3900 = vmatpush3.bf16.msra.mxu0 %v4162_v36 }
 0x90b   : > { %3901 = vmatprep.subr.bf16.mxu0 %v4421_v3 }
 0x90e   : > { %3902 = vmatpush3.bf16.msra.mxu0 %v4166_v48 }
 0x90f   : > { %3903 = vmatprep.subr.bf16.mxu0 %v4421_v3 }
 0x912   : > { %3904 = vmatpush3.bf16.msra.mxu0 %v4170_v51 }
 0x913   : > { %3905 = vmatprep.subr.bf16.mxu0 %v4421_v3 }
 0x916   : > { %3906 = vmatpush3.bf16.msra.mxu0 %v4174_v54 }
 0x917   : > { %3907 = vmatprep.subr.bf16.mxu0 %v4421_v3 }
 0x91a   : > { %3908 = vmatpush3.bf16.msra.mxu0 %v4178_v58 }
 0x91b   : > { %3909 = vmatprep.subr.bf16.mxu0 %v4421_v3 }
 0x91e   : > { %3910 = vmatpush3.bf16.msra.mxu0 %v4182_v61 }
 0x91f   : > { %3911 = vmatprep.subr.bf16.mxu0 %v4421_v3 }
 0x922   : > { %3912 = vmatpush3.bf16.msra.mxu0 %v4186_v0 }
 0x923   : > { %3941 = vmatprep.subr.bf16.mxu0 %v4421_v3 }
 0x9c5   : > { %v3738_v23 = vpop.f32.mrf.mxu0 }
 0x9c7   : > { %v3739_v25 = vpop.f32.mrf.mxu0 }
 0x9c8   : > { %v3740_v26 = vadd.f32 %v3739_v25, %v3738_v23 }
 0x9c9   : > { %v3741_v27 = vpop.f32.mrf.mxu0 }
 0x9ca   : > { %v1939_v28 = vadd.f32 %v3740_v26, %v3538_v24 }
 0x9cb   : > { %v3742_v29 = vpop.f32.mrf.mxu0 }
 0x9cc   : > { %v1944_v30 = vadd.f32 %v1939_v28, %v4842_v33 }
 0x9ce   : > { %1947 = vadd.xlane.f32.xlu0 %v1944_v30 }
 0xa57   : > { %v1948_v38 = vpop.xlane.xlu0 %1947 }
 0xa58   : > { %v1949_v40 = vmul.f32 0.0078125, %v1948_v38 }
 0xa5a   : > { %v1950_v33 = vsub.f32 %v1944_v30, %v1949_v40 }
 0xa5c   : > { %v1951_v41 = vmul.f32 %v1950_v33, %v1950_v33 }
 0xa5e   : > { %1952 = vadd.xlane.f32.xlu1 %v1951_v41 }
 0xae7   : > { %v1953_v1 = vpop.xlane.xlu1 %1952 }
 0xae8   : > { %v1954_v2 = vmul.f32 0.0078125, %v1953_v1 }
 0xaea   : > { %v1955_v4 = vadd.f32 1e-12, %v1954_v2 }
 0xaec   : > { %4267 = vrsqrt.f32 %v1955_v4 }
 0xaf9   : > { %v4268_v5 = vpop.eup %4267 }
 0xafa   : > { %v1957_v7 = vmul.f32 %v4268_v5, %v1950_v33 }
 0xafc   : > { %v1964_v8 = vmul.f32 %v3555_v6, %v1957_v7 }
 0xafe   : > { %v4874_v9 = vadd.f32 %v3556_v39, %v1964_v8 }
 0xb00   : > { %v2005_v10 = vpack.c.bf16 %v4874_v9, %v4874_v9 }
 0xb02   : > { %2185 = vmatmul.mubr.bf16.vlgmr.msra.gmra.mxu1 %v2005_v10  ;;  %3914 = vmatmul.mubr.bf16.vlgmr.msra.gmra.mxu0 %v2005_v10 }
 0xb03   : > { %3919 = vmatprep.mubr.msk.bf16.mxu1 %vm4423_vm0, %v4421_v3  ;;  %3943 = vmatprep.mubr.msk.bf16.mxu0 %vm4423_vm0, %v4421_v3 }
 0xbc2   : > { %v2186_v14 = vpop.f32.mrf.mxu1  ;;  %v2227_v55 = vpop.f32.mrf.mxu0 }
 0xbc3   : > { %v2228_v26 = vadd.f32 %v2227_v55, %v2020_v17  ;;  %v2187_v28 = vadd.f32 %v2186_v14, %v2012_v21 }
 0xbc4   : > { %v2188_v15 = vpop.f32.mrf.mxu1  ;;  %v3915_v16 = vpop.f32.mrf.mxu0 }
 0xbc5   : > { %v2189_v18 = vadd.f32 %v2188_v15, %v2016_v13  ;;  %v4891_v29 = vpack.c.bf16 %v2228_v26, %v2228_v26  ;;  %v2233_v30 = vpack.c.bf16 %v2187_v28, %v2187_v28 }
 0xbc6   : > { %v2190_v19 = vpop.f32.mrf.mxu1  ;;  %v2230_v20 = vpop.f32.mrf.mxu0 }
 0xbc7   : > { %v2234_v23 = vpack.c.bf16 %v2189_v18, %v2189_v18  ;;  %v2298_v42 = vsel %vm1065_vm1, %v4891_v29, 0 }
 0xbc8   : > { %v2191_v24 = vpop.f32.mrf.mxu1  ;;  %v3916_v25 = vpop.f32.mrf.mxu0 }
 0xbc9   : > { %v2240_v27 = vsel %vm1002_vm2, %v2234_v23, 0 }
 0xbca   : > { %3918 = vmatpush3.bf16.xpose.msra.mxu1 %v2240_v27 }
 0xbcb   : > { %3923 = vmatprep.subr.bf16.mxu1 %v4421_v3 }
 0xbd1   : > { %3920 = vmatmul.mubr.msk.bf16.vlgmr.msra.gmra.mxu1 %vm1002_vm2, %v2233_v30 }
 0xbd2   : > { %3924 = vmatpush3.bf16.msra.mxu1 %v2298_v42  ;;  %3925 = vmatprep.mubr.msk.bf16.mxu1 %vm4423_vm0, %v4421_v3 }
 0xbd3   : > { %3929 = vmatprep.subr.bf16.mxu1 %v4421_v3 }
 0xc91   : > { %v2276_v43 = vpop.f32.mrf.mxu1 }
 0xc92   : > { %v2277_v31 = vadd.f32 %v4711_v12, %v2276_v43 }
 0xc93   : > { %v3921_v32 = vpop.f32.mrf.mxu1 }
 0xc94   : > { %v2282_v34 = vsel %vm1049_vm3, %v2277_v31, -inf }
 0xc95   : > { %2283 = vmax.xlane.f32.xlu0 %v2282_v34  ;;  %v2279_v35 = vpop.f32.mrf.mxu1 }
 0xc97   : > { %v3922_v36 = vpop.f32.mrf.mxu1 }
 0xcab   : > { %2344 = vrot.lane.b32.xlu0 %v2234_v23, %s5197_s24 }
 0xcaf   : > { %2453 = vrot.lane.b32.xlu0 %v2233_v30, %s5198_s23 }
 0xcb3   : > { %2563 = vrot.lane.b32.xlu0 %v2233_v30, %s5222_s30 }
 0xd1e   : > { %v2284_v37 = vpop.xlane.xlu0 %2283 }
 0xd1f   : > { %v2285_v38 = vsub.f32 %v2277_v31, %v2284_v37 }
 0xd21   : > { %v2286_v40 = vmul.f32 1.442695, %v2285_v38 }
 0xd22   : > { %v2345_v50 = vpop.permute.xlu0 %2344 }
 0xd23   : > { %4269 = vpow2.f32 %v2286_v40  ;;  %v2350_v58 = vsel %vm1002_vm2, %v2345_v50, 0 }
 0xd26   : > { %v2454_v54 = vpop.permute.xlu0 %2453 }
 0xd2a   : > { %v2564_v59 = vpop.permute.xlu0 %2563 }
 0xd30   : > { %v4270_v33 = vpop.eup %4269 }
 0xd31   : > { %v2288_v41 = vsel %vm1049_vm3, %v4270_v33, 0.0 }
 0xd32   : > { %2289 = vadd.xlane.f32.xlu1 %v2288_v41 }
 0xd43   : > { %2341 = vrot.lane.b32.xlu1 %v2233_v30, %s5197_s24 }
 0xd47   : > { %2455 = vrot.lane.b32.xlu1 %v2234_v23, %s5198_s23 }
 0xd4b   : > { %2565 = vrot.lane.b32.xlu1 %v2234_v23, %s5222_s30 }
 0xdbb   : > { %v2290_v44 = vpop.xlane.xlu1 %2289 }
 0xdbc   : > { %4271 = vrcp.f32 %v2290_v44 }
 0xdbf   : > { %v2342_v47 = vpop.permute.xlu1 %2341 }
 0xdc3   : > { %v2456_v48 = vpop.permute.xlu1 %2455 }
 0xdc4   : > { %v2461_v49 = vsel %vm1002_vm2, %v2456_v48, 0 }
 0xdc5   : > { %3942 = vmatpush3.bf16.xpose.msra.mxu0 %v2461_v49 }
 0xdc6   : > { %3953 = vmatprep.subr.bf16.mxu0 %v4421_v3 }
 0xdc7   : > { %v2566_v52 = vpop.permute.xlu1 %2565 }
 0xdc8   : > { %v2571_v56 = vsel %vm1002_vm2, %v2566_v52, 0 }
 0xdc9   : > { %v4272_v51 = vpop.eup %4271 }
 0xdca   : > { %v2292_v53 = vmul.f32 %v4272_v51, %v4270_v33 }
 0xdcc   : > { %3944 = vmatmul.mubr.msk.bf16.vlgmr.msra.gmra.mxu0 %vm1002_vm2, %v2454_v54  ;;  %v2293_v57 = vpack.c.bf16 %v2292_v53, %v2292_v53 }
 0xdcd   : > { %3954 = vmatpush3.bf16.xpose.msra.mxu0 %v2571_v56  ;;  %3955 = vmatprep.mubr.msk.bf16.mxu0 %vm4423_vm0, %v4421_v3  ;;  %v4187_v56 = vld [vmem:[%s5174_s8 + $0x78] sm:$0xff]  }
 0xdce   : > { %3926 = vmatmul.mubr.msk.bf16.vlgmr.msra.gmra.mxu1 %vm1049_vm3, %v2293_v57  ;;  %3965 = vmatprep.subr.bf16.mxu0 %v4421_v3  ;;  %v4188_v57 = vld [vmem:[%s5174_s8 + $0x70] sm:$0xff]  }
 0xdcf   : > { %3930 = vmatpush3.bf16.xpose.msra.mxu1 %v2350_v58  ;;  %3931 = vmatprep.mubr.msk.bf16.mxu1 %vm4423_vm0, %v4421_v3  ;;  %v4189_v58 = vld [vmem:[%s5174_s8 + $0x68] sm:$0xff]  }
 0xdd0   : > { %3935 = vmatprep.subr.bf16.mxu1 %v4421_v3 }
 0xdd4   : > { %3956 = vmatmul.mubr.msk.bf16.vlgmr.msra.gmra.mxu0 %vm1002_vm2, %v2564_v59  ;;  %v4191_v59 = vld [vmem:[%s5174_s8 + $0x58] sm:$0xff]  }
 0xdd5   : > { %3981 = vmatprep.mubr.msk.bf16.mxu0 %vm4423_vm0, %v4421_v3  ;;  %3966 = vmatpush3.bf16.msra.mxu0 %v4187_v56 }
 0xdd6   : > { %3932 = vmatmul.mubr.msk.bf16.vlgmr.msra.gmra.mxu1 %vm1002_vm2, %v2342_v47  ;;  %3967 = vmatprep.subr.bf16.mxu0 %v4421_v3 }
 0xdd7   : > { %3937 = vmatprep.mubr.msk.bf16.mxu1 %vm4423_vm0, %v4421_v3 }
 0xdd9   : > { %3968 = vmatpush3.bf16.msra.mxu0 %v4188_v57 }
 0xdda   : > { %3969 = vmatprep.subr.bf16.mxu0 %v4421_v3 }
 0xddd   : > { %3970 = vmatpush3.bf16.msra.mxu0 %v4189_v58 }
 0xdde   : > { %3971 = vmatprep.subr.bf16.mxu0 %v4421_v3 }
 0xe8c   : > { %v2497_v60 = vpop.f32.mrf.mxu0 }
 0xe8d   : > { %v2498_v61 = vadd.f32 %v4711_v12, %v2497_v60  ;;  %v4192_v60 = vld [vmem:[%s5174_s8 + $0x50] sm:$0xff]  }
 0xe8e   : > { %v4927_v62 = vpop.f32.mrf.mxu1  ;;  %v3945_v63 = vpop.f32.mrf.mxu0 }
 0xe8f   : > { %v2503_v0 = vsel %vm1049_vm3, %v2498_v61, -inf }
 0xe90   : > { %2504 = vmax.xlane.f32.xlu0 %v2503_v0  ;;  %v3927_v1 = vpop.f32.mrf.mxu1  ;;  %v2500_v2 = vpop.f32.mrf.mxu0 }
 0xe91   : > { %v4194_v1 = vld [vmem:[%s5174_s8 + $0x40] sm:$0xff]  }
 0xe92   : > { %v2337_v4 = vpop.f32.mrf.mxu1  ;;  %v3946_v5 = vpop.f32.mrf.mxu0 }
 0xe94   : > { %v3928_v6 = vpop.f32.mrf.mxu1  ;;  %v2607_v7 = vpop.f32.mrf.mxu0 }
 0xe95   : > { %v2608_v39 = vadd.f32 %v4711_v12, %v2607_v7 }
 0xe96   : > { %v2386_v8 = vpop.f32.mrf.mxu1  ;;  %v3957_v10 = vpop.f32.mrf.mxu0 }
 0xe97   : > { %v2387_v11 = vadd.f32 %v4711_v12, %v2386_v8  ;;  %v2613_v13 = vsel %vm1049_vm3, %v2608_v39, -inf }
 0xe98   : > { %2614 = vmax.xlane.f32.xlu0 %v2613_v13  ;;  %v3933_v14 = vpop.f32.mrf.mxu1  ;;  %v2610_v55 = vpop.f32.mrf.mxu0 }
 0xe99   : > { %v2392_v15 = vsel %vm1049_vm3, %v2387_v11, -inf }
 0xe9a   : > { %v3958_v16 = vpop.f32.mrf.mxu0  ;;  %2393 = vmax.xlane.f32.xlu1 %v2392_v15  ;;  %v2389_v17 = vpop.f32.mrf.mxu1 }
 0xe9c   : > { %v3934_v18 = vpop.f32.mrf.mxu1 }
 0xf19   : > { %v2505_v19 = vpop.xlane.xlu0 %2504 }
 0xf1a   : > { %v2506_v20 = vsub.f32 %v2498_v61, %v2505_v19  ;;  %v4193_v61 = vld [vmem:[%s5174_s8 + $0x48] sm:$0xff]  }
 0xf1c   : > { %v2507_v21 = vmul.f32 1.442695, %v2506_v20  ;;  %v3607_v20 = vld [vmem:[%s5175_s9 + $0x1] ss:$0 sm:$0xff] }
 0xf1e   : > { %4273 = vpow2.f32 %v2507_v21 }
 0xf21   : > { %v2615_v23 = vpop.xlane.xlu0 %2614 }
 0xf22   : > { %v2616_v24 = vsub.f32 %v2608_v39, %v2615_v23 }
 0xf23   : > { %v2394_v25 = vpop.xlane.xlu1 %2393 }
 0xf24   : > { %v2617_v26 = vmul.f32 1.442695, %v2616_v24  ;;  %v2395_v12 = vsub.f32 %v2387_v11, %v2394_v25 }
 0xf26   : > { %4275 = vpow2.f32 %v2617_v26  ;;  %v2396_v27 = vmul.f32 1.442695, %v2395_v12 }
 0xf28   : > { %4277 = vpow2.f32 %v2396_v27  ;;  %v4197_v27 = vld [vmem:[%s5178_s12 + $0xf4] ss:$8 sps:$4 sm:$0xff]  }
 0xf2b   : > { %v4274_v28 = vpop.eup %4273 }
 0xf2c   : > { %v2509_v30 = vsel %vm1049_vm3, %v4274_v28, 0.0 }
 0xf2d   : > { %2510 = vadd.xlane.f32.xlu0 %v2509_v30 }
 0xf33   : > { %v4276_v42 = vpop.eup %4275 }
 0xf34   : > { %v2619_v43 = vsel %vm1049_vm3, %v4276_v42, 0.0 }
 0xf35   : > { %v4278_v31 = vpop.eup %4277  ;;  %2620 = vadd.xlane.f32.xlu1 %v2619_v43 }
 0xf36   : > { %v2398_v32 = vsel %vm1049_vm3, %v4278_v31, 0.0 }
 0xf39   : > { %2399 = vadd.xlane.f32.xlu1 %v2398_v32  ;;  %v4203_v32 = vld [vmem:[%s5178_s12 + $0xd4] ss:$8 sps:$4 sm:$0xff]  }
 0xf43   : > { %2405 = vrot.lane.b32.xlu0 %v4891_v29, %s5197_s24 }
 0xf4a   : > { %2515 = vrot.lane.b32.xlu1 %v4891_v29, %s5198_s23 }
 0xf4e   : > { %2625 = vrot.lane.b32.xlu1 %v4891_v29, %s5222_s30 }
 0xfb6   : > { %v2511_v34 = vpop.xlane.xlu0 %2510 }
 0xfba   : > { %v2406_v35 = vpop.permute.xlu0 %2405 }
 0xfbb   : > { %v2411_v36 = vsel %vm1065_vm1, %v2406_v35, 0  ;;  %v4204_v35 = vld [vmem:[%s5178_s12 + $0xc0] ss:$8 sps:$4 sm:$0xff]  }
 0xfbc   : > { %3936 = vmatpush3.bf16.msra.mxu1 %v2411_v36  ;;  %v4206_v36 = vld [vmem:[%s5178_s12 + $0xc4] ss:$8 sps:$4 sm:$0xff]  }
 0xfbd   : > { %3947 = vmatprep.subr.bf16.mxu1 %v4421_v3 }
 0xfbe   : > { %v2621_v37 = vpop.xlane.xlu1 %2620 }
 0xfc2   : > { %v2400_v38 = vpop.xlane.xlu1 %2399 }
 0xfc3   : > { %4279 = vrcp.f32 %v2400_v38  ;;  %v4207_v38 = vld [vmem:[%s5178_s12 + $0xb0] ss:$8 sps:$4 sm:$0xff]  }
 0xfc4   : > { %4281 = vrcp.f32 %v2511_v34  ;;  %v4201_v34 = vld [vmem:[%s5178_s12 + $0xd0] ss:$8 sps:$4 sm:$0xff]  }
 0xfc5   : > { %4283 = vrcp.f32 %v2621_v37  ;;  %v4209_v37 = vld [vmem:[%s5178_s12 + $0xb4] ss:$8 sps:$4 sm:$0xff]  }
 0xfc6   : > { %v2516_v41 = vpop.permute.xlu1 %2515 }
 0xfc7   : > { %v2521_v48 = vsel %vm1065_vm1, %v2516_v41, 0  ;;  %v4215_v41 = vld [vmem:[%s5178_s12 + $0x94] ss:$8 sps:$4 sm:$0xff]  }
 0xfca   : > { %v2626_v49 = vpop.permute.xlu1 %2625 }
 0xfcb   : > { %v2631_v52 = vsel %vm1065_vm1, %v2626_v49, 0 }
 0xfd0   : > { %v4280_v40 = vpop.eup %4279 }
 0xfd1   : > { %v2402_v33 = vmul.f32 %v4280_v40, %v4278_v31  ;;  %v4282_v47 = vpop.eup %4281  ;;  %v4212_v40 = vld [vmem:[%s5178_s12 + $0xa4] ss:$8 sps:$4 sm:$0xff]  }
 0xfd2   : > { %v2513_v29 = vmul.f32 %v4282_v47, %v4274_v28  ;;  %v4284_v51 = vpop.eup %4283  ;;  %v4200_v28 = vld [vmem:[%s5178_s12 + $0xe4] ss:$8 sps:$4 sm:$0xff]  }
 0xfd3   : > { %v2403_v44 = vpack.c.bf16 %v2402_v33, %v2402_v33  ;;  %v2623_v53 = vmul.f32 %v4284_v51, %v4276_v42  ;;  %v4210_v33 = vld [vmem:[%s5178_s12 + $0xa0] ss:$8 sps:$4 sm:$0xff]   ;;  %v4218_v47 = vld [vmem:[%s5178_s12 + $0x84] ss:$8 sps:$4 sm:$0xff]  }
 0xfd4   : > { %v2514_v50 = vpack.c.bf16 %v2513_v29, %v2513_v29 }
 0xfd5   : > { %3938 = vmatmul.mubr.msk.bf16.vlgmr.msra.gmra.mxu1 %vm1049_vm3, %v2403_v44  ;;  %v2624_v54 = vpack.c.bf16 %v2623_v53, %v2623_v53  ;;  %v4213_v44 = vld [vmem:[%s5178_s12 + $0x90] ss:$8 sps:$4 sm:$0xff]  }
 0xfd6   : > { %3948 = vmatpush3.bf16.msra.mxu1 %v2521_v48  ;;  %3949 = vmatprep.mubr.msk.bf16.mxu1 %vm4423_vm0, %v4421_v3  ;;  %v4216_v48 = vld [vmem:[%s5178_s12 + $0x80] ss:$8 sps:$4 sm:$0xff]  }
 0xfd7   : > { %3959 = vmatprep.subr.bf16.mxu1 %v4421_v3 }
 0xfdd   : > { %3950 = vmatmul.mubr.msk.bf16.vlgmr.msra.gmra.mxu1 %vm1049_vm3, %v2514_v50 }
 0xfde   : > { %3960 = vmatpush3.bf16.msra.mxu1 %v2631_v52  ;;  %3961 = vmatprep.mubr.msk.bf16.mxu1 %vm4423_vm0, %v4421_v3  ;;  %v3618_v52 = vld [vmem:[%s5176_s10 + $0x1] ss:$0 sm:$0xff] }
 0xfdf   : > { %2943 = vmatprep.subr.bf16.mxu1 %v4197_v27 }
 0xfe5   : > { %3962 = vmatmul.mubr.msk.bf16.vlgmr.msra.gmra.mxu1 %vm1049_vm3, %v2624_v54  ;;  %v3619_v54 = vld [vmem:[%s5177_s11 + $0x1] ss:$0 sm:$0xff] }
 0xfe6   : > { %2975 = vmatprep.mubr.bf16.mxu1 %v4422_v22  ;;  %v4190_v22 = vld [vmem:[%s5174_s8 + $0x60] sm:$0xff]  }
 0xfe7   : > { %3972 = vmatpush3.bf16.msra.mxu0 %v4190_v22  ;;  %v4219_v22 = vld [vmem:[#allocation5 + $0xf8] sm:$0xff]  }
 0xfe8   : > { %3973 = vmatprep.subr.bf16.mxu0 %v4421_v3 }
 0xfeb   : > { %3974 = vmatpush3.bf16.msra.mxu0 %v4191_v59  ;;  %v4220_v59 = vld [vmem:[#allocation5 + $0xb8] sm:$0xff]  }
 0xfec   : > { %3975 = vmatprep.subr.bf16.mxu0 %v4421_v3 }
 0xfef   : > { %3976 = vmatpush3.bf16.msra.mxu0 %v4192_v60  ;;  %v4221_v60 = vld [vmem:[#allocation5 + $0xf0] sm:$0xff]  }
 0xff0   : > { %3977 = vmatprep.subr.bf16.mxu0 %v4421_v3 }
 0xff3   : > { %3978 = vmatpush3.bf16.msra.mxu0 %v4193_v61  ;;  %v4222_v61 = vld [vmem:[#allocation5 + $0xb0] sm:$0xff]  }
 0xff4   : > { %3979 = vmatprep.subr.bf16.mxu0 %v4421_v3 }
 0xff7   : > { %3980 = vmatpush3.bf16.msra.mxu0 %v4194_v1  ;;  %v4225_v1 = vld [vmem:[#allocation5 + $0xe0] sm:$0xff]  }
 0xff8   : > { %3778 = vmatprep.subr.bf16.mxu0 %v4219_v22  ;;  %v4241_v22 = vld [vmem:[%s5184_s18 + $0x8] sm:$0xff]  }
0x1095   : > { %v2447_v63 = vpop.f32.mrf.mxu1 }
0x1096   : > { %2674 = vrot.lane.b32.xlu0 %v2447_v63, %s5222_s30  ;;  %v4223_v63 = vld [vmem:[#allocation5 + $0xe8] sm:$0xff]   ;;  %s5223_s30 = sld [smem:[#allocation19_spill]] }
0x1097   : > { %v3939_v0 = vpop.f32.mrf.mxu1 }
0x1098   : > { %v4224_v0 = vld [vmem:[#allocation5 + $0xa8] sm:$0xff]  }
0x1099   : > { %v2450_v2 = vpop.f32.mrf.mxu1 }
0x109a   : > { %v4226_v2 = vld [vmem:[#allocation5 + $0xa0] sm:$0xff]  }
0x109b   : > { %v3940_v4 = vpop.f32.mrf.mxu1 }
0x109c   : > { %v4227_v4 = vld [vmem:[#allocation5 + $0xd8] sm:$0xff]   ;;  %s698_s29 = scalar_lea.vmem %s5223_s30, %s4627_s1 }
0x109d   : > { %v2557_v5 = vpop.f32.mrf.mxu1 }
0x109e   : > { %2678 = vrot.lane.b32.xlu1 %v2557_v5, %s5198_s23  ;;  %v4228_v5 = vld [vmem:[#allocation5 + $0x98] sm:$0xff]  }
0x109f   : > { %v3951_v6 = vpop.f32.mrf.mxu1 }
0x10a0   : > { %v4229_v6 = vld [vmem:[#allocation5 + $0xd0] sm:$0xff]  }
0x10a1   : > { %v2560_v7 = vpop.f32.mrf.mxu1 }
0x10a2   : > { %v4230_v7 = vld [vmem:[#allocation5 + $0x90] sm:$0xff]  }
0x10a3   : > { %v3952_v39 = vpop.f32.mrf.mxu1 }
0x10a4   : > { %v4231_v39 = vld [vmem:[#allocation5 + $0xc8] sm:$0xff]  }
0x10a5   : > { %v2667_v8 = vpop.f32.mrf.mxu1 }
0x10a6   : > { %2682 = vrot.lane.b32.xlu0 %v2667_v8, %s5197_s24  ;;  %v4232_v8 = vld [vmem:[#allocation5 + $0x88] sm:$0xff]   ;;  %s5224_s24 = sld [smem:[#allocation20_spill]] }
0x10a7   : > { %v3963_v10 = vpop.f32.mrf.mxu1 }
0x10a8   : > { %v4233_v10 = vld [vmem:[#allocation5 + $0xc0] sm:$0xff]  }
0x10a9   : > { %v2670_v11 = vpop.f32.mrf.mxu1 }
0x10aa   : > { %v4234_v11 = vld [vmem:[#allocation5 + $0x80] sm:$0xff]  }
0x10ab   : > { %v3964_v13 = vpop.f32.mrf.mxu1 }
0x10ac   : > { %v3636_v13 = vld [vmem:[%s5179_s13 + $0x2] sm:$0x3]  ;;  %s702_s23 = scalar_lea.vmem %s5224_s24, %s4627_s1  ;;  %s4427_s1 = smov [#allocation7]  }
0x1108   : > { %v2675_v14 = vpop.permute.xlu0 %2674 }
0x1109   : > { %v2685_v15 = vsel %vm1002_vm2, %v4927_v62, %v2675_v14  ;;  %v4195_v62 = vld [vmem:[%s5178_s12 + $0xf0] ss:$8 sps:$4 sm:$0xff]   ;;  %v2856_v14 = vrot.slane %v3636_v13, %v4670_v46 }
0x110a   : > { %2944 = vmatpush1.bf16.msra.mxu1 %v4195_v62 }
0x110b   : > { %2945 = vmatprep.subr.bf16.mxu1 %v4200_v28 }
0x1110   : > { %v2679_v55 = vpop.permute.xlu1 %2678 }
0x1111   : > { %v2686_v16 = vsel %vm1455_vm4, %v2685_v15, %v2679_v55  ;;  %v2860_v55 = vrot.slane %v3636_v13, %v4667_v45 }
0x1118   : > { %v2683_v17 = vpop.permute.xlu0 %2682 }
0x1119   : > { %v2687_v18 = vsel %vm1457_vm5, %v2686_v16, %v2683_v17 }
0x111a   : > { %v2705_v19 = vpack.c.bf16 %v2687_v18, %v2687_v18 }
0x111c   : > { %3982 = vmatmul.mubr.bf16.vlgmr.msra.gmra.mxu0 %v2705_v19 }
0x111d   : > { %3779 = vmatpush3.bf16.msra.mxu0 %v4220_v59  ;;  %v4242_v59 = vld [vmem:[%s5184_s18] sm:$0xff]  }
0x111e   : > { %3780 = vmatprep.subr.bf16.mxu0 %v4221_v60  ;;  %v3323_v60 = vld [vmem:[%s698_s29] sm:$0xff]  ;;  %s3685_s29 = sshll.u32 %s4554_s2, 7 }
0x111f   : > { %s5124_s0 = scalar_lea.hbm %s5227_s27, %s3685_s29 }
0x1121   : > { %3781 = vmatpush3.bf16.msra.mxu0 %v4222_v61  ;;  %v3324_v61 = vld [vmem:[%s702_s23] sm:$0xff]  ;;  %s685_s23 = sand.u32 1, %s4405_s22  }
0x1122   : > { %3782 = vmatprep.subr.bf16.mxu0 %v4223_v63  ;;  %s3472_s24 = sshll.u32 %s685_s23, 3  ;;  %s3337_s2 = scalar_lea.sflag [#allocation4], %s685_s23 }
0x1123   : > { %s687_s3 = scalar_lea.vmem [#allocation7], %s3472_s24  ;;  %s4349_s24 = sshll.u32 %s4427_s1, 4  ;;  %s4350_s24 = int_to_ptr.vmem [resolvable:$false] %s4349_s24 }
0x1124   : > { %s3350_s21 = sshll.u32 %s687_s3, 4  ;;  %s4351_s28 = scalar_lea.vmem %s4350_s24, 256  ;;  %s5126_s21 = int_to_ptr.vmem [resolvable:$true] %s3350_s21 }
0x1125   : > { %3783 = vmatpush3.bf16.msra.mxu0 %v4224_v0  ;;  %s4345_s26 = scalar_lea.vmem %s5126_s21, 128  ;;  %p4352_p11 = scmp.lt.s32.totalorder %s5126_s21, %s4350_s24 }
0x1126   : > { %3784 = vmatprep.subr.bf16.mxu0 %v4225_v1  ;;  %p4346_p10 = scmp.ne.s32.totalorder %s5126_s21, %s4345_s26  ;;  %p4353_p0 = scmp.lt.s32.totalorder %s4351_s28, %s4345_s26 }
0x1128   : > { %p4347_p12 = pnand %p4346_p10, %p4571_p5  ;;  %p4354_p1 = por %p4353_p0, %p4352_p11 }
0x1129   : > { %3785 = vmatpush3.bf16.msra.mxu0 %v4226_v2  ;;  %v3673_v2 = vld [vmem:[%s5182_s16 + $0x1] ss:$0 sm:$0xff] }
0x112a   : > { %3786 = vmatprep.subr.bf16.mxu0 %v4227_v4  ;;  %p4348_p8 = pneg %p4347_p12 }
0x112c   : > { %p4355_p3 = pnand %p4354_p1, %p4348_p8 }
0x112d   : > { %3787 = vmatpush3.bf16.msra.mxu0 %v4228_v5  ;;  %v3674_v5 = vld [vmem:[%s5183_s17 + $0x1] ss:$0 sm:$0xff] }
0x112e   : > { %3788 = vmatprep.subr.bf16.mxu0 %v4229_v6 }
0x1131   : > { %3789 = vmatpush3.bf16.msra.mxu0 %v4230_v7 }
0x1132   : > { %3790 = vmatprep.subr.bf16.mxu0 %v4231_v39 }
0x1135   : > { %3791 = vmatpush3.bf16.msra.mxu0 %v4232_v8  ;;  %v3675_v8 = vld [vmem:[%s5185_s19] ss:$0 sm:$0xff] }
0x1136   : > { %3792 = vmatprep.subr.bf16.mxu0 %v4233_v10 }
0x1139   : > { %3793 = vmatpush3.bf16.msra.mxu0 %v4234_v11 }
0x11dc   : > { %v2796_v21 = vpop.f32.mrf.mxu0 }
0x11dd   : > { %v2797_v23 = vadd.f32 %v3607_v20, %v2796_v21 }
0x11de   : > { %v3983_v24 = vpop.f32.mrf.mxu0 }
0x11df   : > { %v2802_v25 = vadd.f32 %v2797_v23, %v4874_v9  ;;  %v4198_v9 = vld [vmem:[%s5178_s12 + $0xe0] ss:$8 sps:$4 sm:$0xff]  }
0x11e0   : > { %v2799_v26 = vpop.f32.mrf.mxu0  ;;  %2946 = vmatpush1.bf16.msra.mxu1 %v4198_v9 }
0x11e1   : > { %2807 = vadd.xlane.f32.xlu1 %v2802_v25  ;;  %2947 = vmatprep.subr.bf16.mxu1 %v4203_v32 }
0x11e2   : > { %v3984_v12 = vpop.f32.mrf.mxu0 }
0x11e4   : > { %2948 = vmatpush1.bf16.msra.mxu1 %v4201_v34 }
0x11e5   : > { %2949 = vmatprep.subr.bf16.mxu1 %v4206_v36 }
0x11e8   : > { %2950 = vmatpush1.bf16.msra.mxu1 %v4204_v35 }
0x11e9   : > { %2951 = vmatprep.subr.bf16.mxu1 %v4209_v37 }
0x11ec   : > { %2952 = vmatpush1.bf16.msra.mxu1 %v4207_v38  ;;  %v3654_v38 = vld [vmem:[%s5181_s15 + $0x1] ss:$0 sm:$0xff] }
0x11ed   : > { %2953 = vmatprep.subr.bf16.mxu1 %v4212_v40 }
0x11f0   : > { %2954 = vmatpush1.bf16.msra.mxu1 %v4210_v33 }
0x11f1   : > { %2955 = vmatprep.subr.bf16.mxu1 %v4215_v41 }
0x11f4   : > { %2956 = vmatpush1.bf16.msra.mxu1 %v4213_v44 }
0x11f5   : > { %2957 = vmatprep.subr.bf16.mxu1 %v4218_v47 }
0x11f8   : > { %2958 = vmatpush1.bf16.msra.mxu1 %v4216_v48 }
0x11f9   : > { %3985 = vmatprep.subr.bf16.mxu1 %v4421_v3 }
0x126a   : > { %v2808_v30 = vpop.xlane.xlu1 %2807 }
0x126b   : > { %v2809_v42 = vmul.f32 0.0078125, %v2808_v30 }
0x126d   : > { %v2810_v43 = vsub.f32 %v2802_v25, %v2809_v42 }
0x126f   : > { %v2811_v31 = vmul.f32 %v2810_v43, %v2810_v43 }
0x1271   : > { %2812 = vadd.xlane.f32.xlu0 %v2811_v31 }
0x12fa   : > { %v2813_v29 = vpop.xlane.xlu0 %2812 }
0x12fb   : > { %v2814_v49 = vmul.f32 0.0078125, %v2813_v29  ;;  %v4235_v29 = vld [vmem:[%s5184_s18 + $0x38] sm:$0xff]  }
0x12fd   : > { %v2815_v50 = vadd.f32 1e-12, %v2814_v49  ;;  %v4236_v49 = vld [vmem:[%s5184_s18 + $0x30] sm:$0xff]  }
0x12ff   : > { %4285 = vrsqrt.f32 %v2815_v50 }
0x130c   : > { %v4286_v51 = vpop.eup %4285 }
0x130d   : > { %v2817_v53 = vmul.f32 %v4286_v51, %v2810_v43 }
0x130f   : > { %v2824_v56 = vmul.f32 %v3618_v52, %v2817_v53 }
0x1311   : > { %v5053_v57 = vadd.f32 %v3619_v54, %v2824_v56  ;;  %v4237_v54 = vld [vmem:[%s5184_s18 + $0x28] sm:$0xff]   ;;  %v4238_v56 = vld [vmem:[%s5184_s18 + $0x20] sm:$0xff]  }
0x1313   : > { %v2849_v58 = vpack.c.bf16 %v5053_v57, %v5053_v57 }
0x1315   : > { %2976 = vmatmul.mubr.bf16.vlgmr.msra.gmra.mxu1 %v2849_v58  ;;  %v4240_v58 = vld [vmem:[%s5184_s18 + $0x10] sm:$0xff]  }
0x1316   : > { %4001 = vmatprep.mubr.msk.bf16.mxu1 %vm4423_vm0, %v4421_v3  ;;  %3986 = vmatpush3.bf16.msra.mxu1 %v4235_v29 }
0x1317   : > { %3987 = vmatprep.subr.bf16.mxu1 %v4421_v3 }
0x131a   : > { %3988 = vmatpush3.bf16.msra.mxu1 %v4236_v49 }
0x131b   : > { %3989 = vmatprep.subr.bf16.mxu1 %v4421_v3 }
0x131e   : > { %3990 = vmatpush3.bf16.msra.mxu1 %v4237_v54 }
0x131f   : > { %3991 = vmatprep.subr.bf16.mxu1 %v4421_v3 }
0x1322   : > { %3992 = vmatpush3.bf16.msra.mxu1 %v4238_v56 }
0x1323   : > { %3993 = vmatprep.subr.bf16.mxu1 %v4421_v3 }
0x13d5   : > { %v2977_v15 = vpop.f32.mrf.mxu1 }
0x13d6   : > { %v2978_v16 = vadd.f32 %v2977_v15, %v2856_v14 }
0x13d7   : > { %v2979_v17 = vpop.f32.mrf.mxu1 }
0x13d8   : > { %v2984_v18 = vmul.f32 %v2978_v16, %v2978_v16  ;;  %v2980_v19 = vadd.f32 %v2979_v17, %v2860_v55 }
0x13d9   : > { %v2981_v20 = vpop.f32.mrf.mxu1 }
0x13da   : > { %v2986_v21 = vmul.f32 %v2984_v18, %v2978_v16  ;;  %v2985_v23 = vmul.f32 %v2980_v19, %v2980_v19 }
0x13db   : > { %v2982_v24 = vpop.f32.mrf.mxu1 }
0x13dc   : > { %v2988_v25 = vmul.f32 0.044715, %v2986_v21  ;;  %v2987_v26 = vmul.f32 %v2985_v23, %v2980_v19 }
0x13de   : > { %v2990_v12 = vadd.f32 %v2988_v25, %v2978_v16  ;;  %v2989_v62 = vmul.f32 0.044715, %v2987_v26 }
0x13e0   : > { %v2992_v27 = vmul.f32 0.7978846, %v2990_v12  ;;  %v2991_v28 = vadd.f32 %v2989_v62, %v2980_v19 }
0x13e2   : > { %4287 = vtanh.f32 %v2992_v27  ;;  %v2993_v9 = vmul.f32 0.7978846, %v2991_v28 }
0x13e4   : > { %4289 = vtanh.f32 %v2993_v9 }
0x13ef   : > { %v4288_v46 = vpop.eup %4287 }
0x13f0   : > { %v2996_v45 = vadd.f32 1.0, %v4288_v46 }
0x13f1   : > { %v4290_v30 = vpop.eup %4289 }
0x13f2   : > { %v2997_v42 = vadd.f32 1.0, %v4290_v30  ;;  %v2998_v43 = vmul.f32 0.5, %v2996_v45 }
0x13f4   : > { %v2999_v31 = vmul.f32 0.5, %v2997_v42  ;;  %v3000_v32 = vmul.f32 %v2998_v43, %v2978_v16 }
0x13f6   : > { %v3001_v34 = vmul.f32 %v2999_v31, %v2980_v19  ;;  %v3035_v36 = vpack.c.bf16 %v3000_v32, %v3000_v32 }
0x13f8   : > { %v3036_v35 = vpack.c.bf16 %v3001_v34, %v3001_v34 }
0x13fa   : > { %3173 = vmatprep.mubr.bf16.mxu0 %v3036_v35 }
0x13fb   : > { %3174 = vmatmul.mubr.bf16.vlgmr.msra.gmra.mxu0 %v3035_v36 }
0x14bb   : > { %v3794_v37 = vpop.f32.mrf.mxu0 }
0x14bd   : > { %v3795_v40 = vpop.f32.mrf.mxu0 }
0x14be   : > { %v3796_v33 = vadd.f32 %v3795_v40, %v3794_v37 }
0x14bf   : > { %v3797_v41 = vpop.f32.mrf.mxu0 }
0x14c0   : > { %v3176_v44 = vadd.f32 %v3796_v33, %v3654_v38 }
0x14c1   : > { %v3798_v47 = vpop.f32.mrf.mxu0 }
0x14c2   : > { %v3181_v48 = vadd.f32 %v3176_v44, %v5053_v57  ;;  %v4239_v57 = vld [vmem:[%s5184_s18 + $0x18] sm:$0xff]  }
0x14c3   : > { %3994 = vmatpush3.bf16.msra.mxu1 %v4239_v57 }
0x14c4   : > { %3186 = vadd.xlane.f32.xlu0 %v3181_v48  ;;  %3995 = vmatprep.subr.bf16.mxu1 %v4421_v3 }
0x14c7   : > { %3996 = vmatpush3.bf16.msra.mxu1 %v4240_v58 }
0x14c8   : > { %3997 = vmatprep.subr.bf16.mxu1 %v4421_v3 }
0x14cb   : > { %3998 = vmatpush3.bf16.msra.mxu1 %v4241_v22 }
0x14cc   : > { %3999 = vmatprep.subr.bf16.mxu1 %v4421_v3 }
0x14cf   : > { %4000 = vmatpush3.bf16.msra.mxu1 %v4242_v59 }
0x14da   : > { %3326 = vrot.lane.b32.xlu0 %v3323_v60, %s5225_s25 }
0x154d   : > { %v3187_v50 = vpop.xlane.xlu0 %3186 }
0x154e   : > { %v3188_v51 = vmul.f32 0.0078125, %v3187_v50 }
0x1550   : > { %v3189_v52 = vsub.f32 %v3181_v48, %v3188_v51 }
0x1551   : > { %v3327_v11 = vpop.permute.xlu0 %3326 }
0x1552   : > { %v3190_v53 = vmul.f32 %v3189_v52, %v3189_v52 }
0x1554   : > { %3191 = vadd.xlane.f32.xlu1 %v3190_v53 }
0x1565   : > { %3330 = vrot.lane.b32.xlu1 %v3324_v61, %s5226_s20 }
0x15dd   : > { %v3192_v63 = vpop.xlane.xlu1 %3191 }
0x15de   : > { %v3193_v0 = vmul.f32 0.0078125, %v3192_v63 }
0x15e0   : > { %v3194_v3 = vadd.f32 1e-12, %v3193_v0 }
0x15e1   : > { %v3331_v14 = vpop.permute.xlu1 %3330 }
0x15e2   : > { %4291 = vrsqrt.f32 %v3194_v3 }
0x15ef   : > { %v4292_v1 = vpop.eup %4291 }
0x15f0   : > { %v3196_v4 = vmul.f32 %v4292_v1, %v3189_v52 }
0x15f2   : > { %v3203_v6 = vmul.f32 %v3673_v2, %v3196_v4 }
0x15f4   : > { %v3210_v7 = vadd.f32 %v3674_v5, %v3203_v6 }
0x15f6   : > { %v3227_v39 = vpack.c.bf16 %v3210_v7, %v3210_v7 }
0x15f8   : > { %4002 = vmatmul.mubr.bf16.vlgmr.msra.gmra.mxu1 %v3227_v39 }
0x16b8   : > { %v3317_v10 = vpop.f32.mrf.mxu1 }
0x16b9   : > { %v3318_v13 = vadd.f32 %v3675_v8, %v3317_v10 }
0x16ba   : > { %v4003_v55 = vpop.f32.mrf.mxu1 }
0x16bb   : > { %v3333_v15 = vsel %vm1455_vm4, %v3318_v13, %v3327_v11 }
0x16bc   : > { %v3334_v16 = vsel %vm1457_vm5, %v3333_v15, %v3331_v14  ;;  %v3320_v17 = vpop.f32.mrf.mxu1 }
0x16bd   : > { %3335 = vst [vmem:[%s687_s3] sm:$0xff] %v3334_v16 }
0x16be   : > { %v4004_v18 = vpop.f32.mrf.mxu1 }
0x16bf   : > { %4358 = shalt.err (!%p4355_p3)
}
0x16c0   : > { %s4359_s30 = scalar_lea.hbm %s5124_s0, 128  ;;  %s4363_s3 = scalar_lea.hbm %s5227_s27, 256 }
0x16c1   : > { %p4360_p2 = scmp.ne.s32.totalorder %s5124_s0, %s4359_s30  ;;  %p4364_p6 = scmp.lt.s32.totalorder %s5124_s0, %s5227_s27 }
0x16c2   : > { %p4365_p9 = scmp.lt.s32.totalorder %s4363_s3, %s4359_s30 }
0x16c3   : > { %p4361_p4 = pnand %p4360_p2, %p4571_p5 }
0x16c4   : > { %p4366_p7 = por %p4365_p9, %p4364_p6 }
0x16c5   : > { %p4362_p13 = pneg %p4361_p4 }
0x16c7   : > { %p4367_p10 = pnand %p4366_p7, %p4362_p13 }
0x16c9   : > { %4370 = shalt.err (!%p4367_p10)
}
0x16ca   : > { %4013 = dma.vmem_to_hbm [thread:$0]  (%p4571_p5), %s5126_s21, 128, %s5124_s0, %s3337_s2  }
0x16cb PF: > { %s5228_s26 = sld [smem:[#allocation13_spill]] }
0x16cc   : > { %s5229_s1 = sld [smem:[#allocation11_spill]] }
0x16cd   : > { %s5230_s24 = sld [smem:[#allocation16_spill]] }
0x16d1   : > { %p4030_p12 = scmp.ge.s32.totalorder %s5228_s26, 2 }
0x16d2   : > { %s3362_s28 = sand.u32 1, %s5229_s1  }
0x16d3   : > { %p5231_p8 = scmp.ne.s32.totalorder %s5230_s24, 0  ;;  %s3363_s23 = scalar_lea.sflag [#allocation4], %s3362_s28 }
0x16d5   : > { %p4023_p11 = pnand %p4030_p12, %p5231_p8 }
0x16d7   : > { %p4024_p0 = pneg %p4023_p11 }
0x16d9   : > { %4396 = dma.done.wait (%p4024_p0), %s3363_s23, 128  }
0x16da   : > { %4398 = vsyncadd (%p4024_p0), %s3363_s23, 4294967168  ;;  %s5232_s24 = sld [smem:[#allocation14_spill]]  ;;  %s5235_s1 = smov %s4405_s22 }
0x16db   : > { %s5233_s30 = sld [smem:[#allocation12_spill]] }
0x16dc   : > { %s5234_s23 = sld [smem:[#allocation15_spill]] }
0x16e0   : > { %p32_p1 = scmp.ge.s32.totalorder %s5232_s24, 4  }
0x16e1   : > { %s5236_s22 = smov %s5233_s30 }
0x16e2   :  { %34 = sbr.rel (!%p32_p1) target bundleno = 12 (0xc), region = 165 }
0x16e7   :  { %3368 = vsyncpa [#allocation3], 1 }
0x16e8   :  { %3370 = vsyncpa [#allocation3 + $0x1], 1 }
0x16e9   :  { %3371 = vsyncpa [#allocation6], 1 }
0x16ea   :  { %3372 = vsyncpa [#allocation4], 1 }
0x16eb   :  { %3374 = vsyncpa [#allocation4 + $0x1], 1 }

</bundles_post_ra>
